<compile_context>
chip_gen: v5e
topology: v5e:2x2
jax: 0.10.0
libtpu: 0.0.40
codegen_flags: <defaults>
</compile_context>

<pallas_src>
import jax
import jax.numpy as jnp
from jax.experimental import pallas as pl
from jax.experimental.pallas import tpu as pltpu

IN_DIM = 28 * 28          # 784 (== full array dim, so the (8,128) rule is satisfied)
H1 = 512
H2 = 256
OUT = 1
MAX_TILE_B = 2048         # large batch tile; per-step overhead ~0.35 us gets amortized


def _round_up(x, m):
    return (x + m - 1) // m * m


def _cdiv(a, b):
    return (a + b - 1) // b


def discriminator_kernel(x_ref, w1_ref, b1_ref, w2_ref, b2_ref,
                         w3_ref, b3_ref, o_ref):
    tile_b = x_ref.shape[0]

    # bf16 cast of x on the VPU — free filler under the MXU. K = 784 is handled by
    # Mosaic's internal lane padding; no wrapper-side pad needed.
    x = x_ref[...].astype(jnp.bfloat16)

    # Layer 1: (tile_b, 784) bf16 x (784, 512) bf16 -> f32 accumulate on the MXU.
    h1 = jnp.dot(x, w1_ref[...], preferred_element_type=jnp.float32) + b1_ref[...]
    h1 = jnp.maximum(h1, 0.2 * h1)            # LeakyReLU(0.2): single vmax (exact)

    # Layer 2: bf16 MXU matmul, f32 accumulate.
    h2 = jnp.dot(h1.astype(jnp.bfloat16), w2_ref[...],
                 preferred_element_type=jnp.float32) + b2_ref[...]
    h2 = jnp.maximum(h2, 0.2 * h2)

    # Layer 3 (256 -> 1): VPU multiply + lane reduce (avoids an N=1 MXU drain).
    # The reduce result is kept 1-D and re-expressed lane-major (1, tile_b) so the
    # sigmoid epilogue and the store run at full vreg density.
    logits = jnp.sum(h2 * w3_ref[...].astype(jnp.float32), axis=-1)     # (tile_b,)
    logits = logits[None, :] + b3_ref[...]                              # (1, tile_b)

    # Sigmoid: exp + approx reciprocal both on the EUP (own bundle slot, ~free).
    o_ref[...] = pl.reciprocal(1.0 + jnp.exp(-logits), approx=True).astype(o_ref.dtype)


def _pick_tile(b8):
    """Batch-tile selection: big tiles, but >= 2 grid steps once b8 >= 256 so the
    'parallel' axis can occupy both v7x TensorCores (multi-tile tiles are multiples
    of 128 to keep the lane-dense output block aligned)."""
    if b8 < 256:
        return b8                                   # single tile == full array dims
    return min(MAX_TILE_B, _round_up(_cdiv(b8, 2), 128))


def discriminator_forward(x_nchw, params):
    """x_nchw: (B, 1, 28, 28) float32 -> (B, 1) float32 in [0, 1]."""
    w1, b1, w2, b2, w3_row, b3 = params
    B = x_nchw.shape[0]

    # nn.Flatten: metadata-only reshape; x stays f32, cast happens inside the kernel.
    x2d = x_nchw.reshape(B, IN_DIM)

    b8 = _round_up(B, 8)
    tile_b = _pick_tile(b8)
    b_pad = _round_up(b8, tile_b)
    n_tiles = b_pad // tile_b

    # Only pad when B isn't already tile-aligned (common training batches need no copy).
    if b_pad != B:
        x2d = jnp.pad(x2d, ((0, b_pad - B), (0, 0)))

    # x: batch-tiled + pipelined. Triple-buffer on longer grids (v6e DMA smoothing).
    if n_tiles > 2:
        x_spec = pl.BlockSpec((tile_b, IN_DIM), lambda i: (i, 0),
                              pipeline_mode=pl.Buffered(3))
    else:
        x_spec = pl.BlockSpec((tile_b, IN_DIM), lambda i: (i, 0))

    # Constant index map -> operand stays VMEM-resident across grid steps.
    resident = lambda shape: pl.BlockSpec(shape, lambda i: (0,) * len(shape))

    out = pl.pallas_call(
        discriminator_kernel,
        # Lane-dense output: batch lives on the lane axis.
        out_shape=jax.ShapeDtypeStruct((1, b_pad), jnp.float32),
        grid_spec=pltpu.PrefetchScalarGridSpec(
            num_scalar_prefetch=0,
            grid=(n_tiles,),
            in_specs=[
                x_spec,                          # x: (tile_b, 784) f32
                resident((IN_DIM, H1)),          # W1 (bf16, unpadded)
                resident((1, H1)),               # b1 (f32)
                resident((H1, H2)),              # W2 (bf16)
                resident((1, H2)),               # b2 (f32)
                resident((1, H2)),               # W3 row (bf16) for VPU broadcast
                resident((1, OUT)),              # b3 (f32)
            ],
            out_specs=pl.BlockSpec((1, tile_b), lambda i: (0, i)),
        ),
        compiler_params=pltpu.CompilerParams(
            dimension_semantics=("parallel",),   # shard batch tiles across v7x TCs
            vmem_limit_bytes=48 << 20,           # headroom for 2048-row tiles (< v7x 64 MiB)
        ),
    )(x2d, w1, b1, w2, b2, w3_row, b3)

    return out[0, :B].reshape(B, OUT)


def init_params(key):
    """nn.Linear-style init: U(-1/sqrt(fan_in), +1/sqrt(fan_in)); device-ready layout."""
    ks = jax.random.split(key, 6)

    def lin(kw, kb, fan_in, fan_out):
        bound = 1.0 / jnp.sqrt(jnp.float32(fan_in))
        w = jax.random.uniform(kw, (fan_in, fan_out), jnp.float32, -bound, bound)
        b = jax.random.uniform(kb, (1, fan_out), jnp.float32, -bound, bound)
        return w, b

    w1, b1 = lin(ks[0], ks[1], IN_DIM, H1)
    w2, b2 = lin(ks[2], ks[3], H1, H2)
    w3, b3 = lin(ks[4], ks[5], H2, OUT)

    # bf16 weights (f32 biases); W3 stored as a (1, H2) row for the VPU reduce.
    w1 = w1.astype(jnp.bfloat16)
    w2 = w2.astype(jnp.bfloat16)
    w3_row = w3.T.astype(jnp.bfloat16)          # (1, H2)
    return (w1, b1, w2, b2, w3_row, b3)


def reference_forward(x_nchw, params):
    """Pure-JAX reference using the same bf16 parameter values (f32 math)."""
    w1, b1, w2, b2, w3_row, b3 = params
    B = x_nchw.shape[0]
    x = x_nchw.reshape(B, IN_DIM).astype(jnp.bfloat16).astype(jnp.float32)
    h = x @ w1.astype(jnp.float32) + b1
    h = jnp.maximum(h, 0.2 * h)
    h = h.astype(jnp.bfloat16).astype(jnp.float32) @ w2.astype(jnp.float32) + b2
    h = jnp.maximum(h, 0.2 * h)
    logit = h @ w3_row.astype(jnp.float32).T + b3
    return jax.nn.sigmoid(logit)


if __name__ == "__main__":
    key = jax.random.PRNGKey(0)
    kx, kp = jax.random.split(key)

    B = 2
    x = jax.random.normal(kx, (B, 1, 28, 28), jnp.float32)   # MNIST-shaped NCHW input
    params = init_params(kp)

    out = jax.block_until_ready(discriminator_forward(x, params))
    ref = reference_forward(x, params)

    assert out.shape == (B, OUT), out.shape
    assert jnp.allclose(out, ref, atol=2e-2, rtol=2e-2), (out, ref)

    print("KERNEL_OK")
</pallas_src>

<mosaic_0001>
module attributes {stable_mosaic.version = 11 : i64} {
  func.func @discriminator_kernel(%arg0: i32, %arg1: memref<8x784xf32, #tpu.memory_space<vmem>>, %arg2: memref<784x512xbf16, #tpu.memory_space<vmem>>, %arg3: memref<1x512xf32, #tpu.memory_space<vmem>>, %arg4: memref<512x256xbf16, #tpu.memory_space<vmem>>, %arg5: memref<1x256xf32, #tpu.memory_space<vmem>>, %arg6: memref<1x256xbf16, #tpu.memory_space<vmem>>, %arg7: memref<1x1xf32, #tpu.memory_space<vmem>>, %arg8: memref<1x8xf32, #tpu.memory_space<vmem>>) attributes {dimension_semantics = [#tpu.dimension_semantics<parallel>], iteration_bounds = array<i64: 1>, scalar_prefetch = 0 : i64, scratch_operands = 0 : i64, tpu.core_type = #tpu.core_type<tc>, window_params = [{transform_indices = @transform_0, window_bounds = array<i64: 8, 784>}, {pipeline_mode = #tpu.pipeline_mode<synchronous>, transform_indices = @transform_1, window_bounds = array<i64: 784, 512>}, {pipeline_mode = #tpu.pipeline_mode<synchronous>, transform_indices = @transform_2, window_bounds = array<i64: 1, 512>}, {pipeline_mode = #tpu.pipeline_mode<synchronous>, transform_indices = @transform_3, window_bounds = array<i64: 512, 256>}, {pipeline_mode = #tpu.pipeline_mode<synchronous>, transform_indices = @transform_4, window_bounds = array<i64: 1, 256>}, {pipeline_mode = #tpu.pipeline_mode<synchronous>, transform_indices = @transform_5, window_bounds = array<i64: 1, 256>}, {pipeline_mode = #tpu.pipeline_mode<synchronous>, transform_indices = @transform_6, window_bounds = array<i64: 1, 1>}, {transform_indices = @transform_7, window_bounds = array<i64: 1, 8>}]} {
    %c0 = arith.constant 0 : index
    %c0_0 = arith.constant 0 : index
    %0 = vector.load %arg1[%c0, %c0_0] : memref<8x784xf32, #tpu.memory_space<vmem>>, vector<8x784xf32>
    %1 = arith.truncf %0 : vector<8x784xf32> to vector<8x784xbf16>
    %c0_1 = arith.constant 0 : index
    %c0_2 = arith.constant 0 : index
    %2 = vector.load %arg2[%c0_1, %c0_2] : memref<784x512xbf16, #tpu.memory_space<vmem>>, vector<784x512xbf16>
    %cst = arith.constant dense<0.000000e+00> : vector<8x512xf32>
    %3 = tpu.matmul %1, %2, %cst {dimension_numbers = #tpu.dot_dimension_numbers<[1], [0], [0], [1], [0, 0, 1, 1], [], []>} : vector<8x784xbf16>, vector<784x512xbf16>, vector<8x512xf32> -> vector<8x512xf32>
    %c0_3 = arith.constant 0 : index
    %c0_4 = arith.constant 0 : index
    %4 = vector.load %arg3[%c0_3, %c0_4] : memref<1x512xf32, #tpu.memory_space<vmem>>, vector<1x512xf32>
    %5 = vector.broadcast %4 : vector<1x512xf32> to vector<8x512xf32>
    %6 = arith.addf %3, %5 : vector<8x512xf32>
    %cst_5 = arith.constant 2.000000e-01 : f32
    %7 = vector.broadcast %cst_5 : f32 to vector<8x512xf32>
    %8 = arith.mulf %7, %6 : vector<8x512xf32>
    %9 = arith.maximumf %6, %8 : vector<8x512xf32>
    %10 = arith.truncf %9 : vector<8x512xf32> to vector<8x512xbf16>
    %c0_6 = arith.constant 0 : index
    %c0_7 = arith.constant 0 : index
    %11 = vector.load %arg4[%c0_6, %c0_7] : memref<512x256xbf16, #tpu.memory_space<vmem>>, vector<512x256xbf16>
    %cst_8 = arith.constant dense<0.000000e+00> : vector<8x256xf32>
    %12 = tpu.matmul %10, %11, %cst_8 {dimension_numbers = #tpu.dot_dimension_numbers<[1], [0], [0], [1], [0, 0, 1, 1], [], []>} : vector<8x512xbf16>, vector<512x256xbf16>, vector<8x256xf32> -> vector<8x256xf32>
    %c0_9 = arith.constant 0 : index
    %c0_10 = arith.constant 0 : index
    %13 = vector.load %arg5[%c0_9, %c0_10] : memref<1x256xf32, #tpu.memory_space<vmem>>, vector<1x256xf32>
    %14 = vector.broadcast %13 : vector<1x256xf32> to vector<8x256xf32>
    %15 = arith.addf %12, %14 : vector<8x256xf32>
    %cst_11 = arith.constant 2.000000e-01 : f32
    %16 = vector.broadcast %cst_11 : f32 to vector<8x256xf32>
    %17 = arith.mulf %16, %15 : vector<8x256xf32>
    %18 = arith.maximumf %15, %17 : vector<8x256xf32>
    %c0_12 = arith.constant 0 : index
    %c0_13 = arith.constant 0 : index
    %19 = vector.load %arg6[%c0_12, %c0_13] : memref<1x256xbf16, #tpu.memory_space<vmem>>, vector<1x256xbf16>
    %20 = arith.extf %19 : vector<1x256xbf16> to vector<1x256xf32>
    %21 = vector.broadcast %20 : vector<1x256xf32> to vector<8x256xf32>
    %22 = arith.mulf %18, %21 : vector<8x256xf32>
    %cst_14 = arith.constant dense<0.000000e+00> : vector<8xf32>
    %23 = vector.multi_reduction <add>, %22, %cst_14 [1] : vector<8x256xf32> to vector<8xf32>
    %24 = vector.shape_cast %23 : vector<8xf32> to vector<1x8xf32>
    %c0_15 = arith.constant 0 : index
    %c0_16 = arith.constant 0 : index
    %25 = vector.load %arg7[%c0_15, %c0_16] : memref<1x1xf32, #tpu.memory_space<vmem>>, vector<1x1xf32>
    %26 = vector.broadcast %25 : vector<1x1xf32> to vector<1x8xf32>
    %27 = arith.addf %24, %26 : vector<1x8xf32>
    %cst_17 = arith.constant 0.000000e+00 : f32
    %28 = vector.broadcast %cst_17 : f32 to vector<1x8xf32>
    %29 = arith.subf %28, %27 : vector<1x8xf32>
    %30 = math.exp %29 : vector<1x8xf32>
    %cst_18 = arith.constant 1.000000e+00 : f32
    %31 = vector.broadcast %cst_18 : f32 to vector<1x8xf32>
    %32 = arith.addf %31, %30 : vector<1x8xf32>
    %33 = tpu.reciprocal %32 {approx = true} : vector<1x8xf32> -> vector<1x8xf32>
    %c0_19 = arith.constant 0 : index
    %c0_20 = arith.constant 0 : index
    %34 = vector.load %arg8[%c0_19, %c0_20] : memref<1x8xf32, #tpu.memory_space<vmem>>, vector<1x8xf32>
    tpu.vector_store %arg8[%c0_19, %c0_20], %33 {strides = array<i32>} : memref<1x8xf32, #tpu.memory_space<vmem>>, vector<1x8xf32>,
    return
  }
  func.func @transform_0(%arg0: i32) -> (i32, i32) {
    %c0_i32 = arith.constant 0 : i32
    %c0_i32_0 = arith.constant 0 : i32
    return %arg0, %c0_i32 : i32, i32
  }
  func.func @transform_1(%arg0: i32) -> (i32, i32) {
    %c0_i32 = arith.constant 0 : i32
    %c0_i32_0 = arith.constant 0 : i32
    %c0_i32_1 = arith.constant 0 : i32
    return %c0_i32, %c0_i32_0 : i32, i32
  }
  func.func @transform_2(%arg0: i32) -> (i32, i32) {
    %c0_i32 = arith.constant 0 : i32
    %c0_i32_0 = arith.constant 0 : i32
    %c0_i32_1 = arith.constant 0 : i32
    return %c0_i32, %c0_i32_0 : i32, i32
  }
  func.func @transform_3(%arg0: i32) -> (i32, i32) {
    %c0_i32 = arith.constant 0 : i32
    %c0_i32_0 = arith.constant 0 : i32
    %c0_i32_1 = arith.constant 0 : i32
    return %c0_i32, %c0_i32_0 : i32, i32
  }
  func.func @transform_4(%arg0: i32) -> (i32, i32) {
    %c0_i32 = arith.constant 0 : i32
    %c0_i32_0 = arith.constant 0 : i32
    %c0_i32_1 = arith.constant 0 : i32
    return %c0_i32, %c0_i32_0 : i32, i32
  }
  func.func @transform_5(%arg0: i32) -> (i32, i32) {
    %c0_i32 = arith.constant 0 : i32
    %c0_i32_0 = arith.constant 0 : i32
    %c0_i32_1 = arith.constant 0 : i32
    return %c0_i32, %c0_i32_0 : i32, i32
  }
  func.func @transform_6(%arg0: i32) -> (i32, i32) {
    %c0_i32 = arith.constant 0 : i32
    %c0_i32_0 = arith.constant 0 : i32
    %c0_i32_1 = arith.constant 0 : i32
    return %c0_i32, %c0_i32_0 : i32, i32
  }
  func.func @transform_7(%arg0: i32) -> (i32, i32) {
    %c0_i32 = arith.constant 0 : i32
    %c0_i32_0 = arith.constant 0 : i32
    return %c0_i32, %arg0 : i32, i32
  }
}

</mosaic_0001>

<bundles_post_ra>
// kernel: tpu_custom_call.1
= control target key start
LH: loop header
LB: loop body
LE: loop exit
PB: predicated region body
PF: predicated region fallthrough
CT: control target
= control target key end

     0   :  { %s3818_s0 = inlined_call_operand.hbm [shape: f32[8,784], index: 0, kind: input, shape index: {}]   ;;  %s3819_s1 = inlined_call_operand.hbm [shape: bf16[784,512], index: 1, kind: input, shape index: {}]   ;;  %s3820_s2 = inlined_call_operand.hbm [shape: f32[1,512], index: 2, kind: input, shape index: {}]   ;;  %s3821_s3 = inlined_call_operand.hbm [shape: bf16[512,256], index: 3, kind: input, shape index: {}]   ;;  %s3822_s4 = inlined_call_operand.vmem [shape: f32[1,256], index: 4, kind: input, shape index: {}]   ;;  %s3823_s5 = inlined_call_operand.vmem [shape: bf16[1,256], index: 5, kind: input, shape index: {}]   ;;  %s3824_s6 = inlined_call_operand.<no memory space> [shape: f32[1,1], index: 6, kind: input, shape index: {}]   ;;  %s3825_s7 = inlined_call_operand.hbm [shape: f32[1,8], index: 7, kind: output, shape index: {}]  }
   0x1   :  { %v12_v0 = vstv %s3824_s6 }
   0x2   :  { %13 = vst [vmem:[#allocation2] sm:$0x1] %v12_v0 }
   0x3   :  { %14 = vsyncpa [#allocation4], 0 }
   0x4   :  { %15 = vsyncpa [#allocation7], 0 }
   0x5   :  { %16 = vsyncpa [#allocation10], 0  ;;  %s33_s28 = sshll.u32 %s3819_s1, 4  ;;  %s34_s28 = int_to_ptr.hbm [resolvable:$true] %s33_s28 }
   0x6   :  { %17 = vsyncpa [#allocation5], 0  ;;  %s3667_s29 = smov [#allocation6]   ;;  %s23_s10 = sshll.u32 %s3818_s0, 4  ;;  %s24_s10 = int_to_ptr.hbm [resolvable:$true] %s23_s10 }
   0x7   :  { %s35_s30 = sshll.u32 %s3667_s29, 4  ;;  %s3668_s11 = smov 256   ;;  %s36_s30 = int_to_ptr.vmem [resolvable:$true] %s35_s30 }
   0x8   :  { %s3669_s12 = smov 16   ;;  %s3670_s6 = smov [#allocation3]  }
   0x9   :  { %41 = dma.hbm_to_vmem [thread:$0]  %s34_s28, 25088, %s36_s30, [#allocation7], %s3668_s11, %s3668_s11, %s3669_s12  }
   0xa   :  { %s25_s13 = sshll.u32 %s3670_s6, 4  ;;  %s47_s16 = sshll.u32 %s3820_s2, 4  ;;  %s26_s13 = int_to_ptr.vmem [resolvable:$true] %s25_s13  ;;  %s48_s16 = int_to_ptr.hbm [resolvable:$true] %s47_s16 }
   0xb   :  { %28 = dma.hbm_to_vmem [thread:$0]  %s24_s10, 896, %s26_s13, [#allocation4]  }
   0xc   :  { %s57_s18 = sshll.u32 %s3821_s3, 4  ;;  %s3671_s19 = smov [#allocation8]   ;;  %s58_s18 = int_to_ptr.hbm [resolvable:$true] %s57_s18 }
   0xd   :  { %s49_s20 = sshll.u32 %s3671_s19, 4  ;;  %s3672_s0 = smov [#allocation9]   ;;  %s50_s20 = int_to_ptr.vmem [resolvable:$true] %s49_s20 }
   0xe   :  { %52 = dma.hbm_to_vmem [thread:$0]  %s48_s16, 64, %s50_s20, [#allocation7]  }
   0xf   :  { %s59_s21 = sshll.u32 %s3672_s0, 4  ;;  %s3673_s22 = smov 128   ;;  %s60_s21 = int_to_ptr.vmem [resolvable:$true] %s59_s21 }
  0x10   :  { %s3674_s23 = smov 8  }
  0x11   :  { %65 = dma.hbm_to_vmem [thread:$0]  %s58_s18, 8192, %s60_s21, [#allocation10], %s3673_s22, %s3673_s22, %s3674_s23  }
  0x12   :  { %3659 = dma.done.wait [#allocation4], 896  }
  0x13   :  { %3660 = vsyncadd [#allocation4], 4294966400 }
  0x14   :  { %3661 = dma.done.wait [#allocation7], 25152  }
  0x15   :  { %3662 = vsyncadd [#allocation7], 4294942144 }
  0x16   :  { %3663 = dma.done.wait [#allocation10], 8192  }
  0x17   :  { %3664 = vsyncadd [#allocation10], 4294959104  ;;  %v2334_v1 = vld [vmem:[#allocation6 + $0xe0] sm:$0xf]  ;;  %v3294_v2 = vld [vmem:[#allocation6 + $0xec] sm:$0xf0] }
  0x18   :  { %v2462_v3 = vld [vmem:[#allocation6 + $0x1e0] sm:$0xf]  ;;  %v2335_v4 = vor.u32 %v3294_v2, %v2334_v1  ;;  %v3326_v5 = vld [vmem:[#allocation6 + $0x1ec] sm:$0xf0]  ;;  %vm1289_vm0 = vcmask 130048   ;;  %s2208_s28 = sshll.u32 %s3825_s7, 4  ;;  %s2209_s28 = int_to_ptr.hbm [resolvable:$true] %s2208_s28 }
  0x19   :  { %v2590_v6 = vld [vmem:[#allocation6 + $0x2e0] sm:$0xf]  ;;  %v3358_v7 = vld [vmem:[#allocation6 + $0x2ec] sm:$0xf0]  ;;  %v2463_v8 = vor.u32 %v3326_v5, %v2462_v3  ;;  %vm2199_vm1 = vcmask 57344  }
  0x1a   :  { %v2591_v9 = vor.u32 %v3358_v7, %v2590_v6  ;;  %v2718_v10 = vld [vmem:[#allocation6 + $0x3e0] sm:$0xf]  ;;  %v3390_v11 = vld [vmem:[#allocation6 + $0x3ec] sm:$0xf0]  ;;  %1293 = vmatpush.bf16.msra.mxu0 %v2335_v4 }
  0x1b   :  { %v2318_v12 = vld [vmem:[#allocation6 + $0xc0] sm:$0xf]  ;;  %v2719_v13 = vor.u32 %v3390_v11, %v2718_v10  ;;  %v3290_v14 = vld [vmem:[#allocation6 + $0xcc] sm:$0xf0]  ;;  %1306 = vmatpush.bf16.msra.mxu1 %v2463_v8 }
  0x1c   :  { %v2446_v15 = vld [vmem:[#allocation6 + $0x1c0] sm:$0xf]  ;;  %v3322_v16 = vld [vmem:[#allocation6 + $0x1cc] sm:$0xf0]  ;;  %1319 = vmatpush.bf16.msra.mxu2 %v2591_v9  ;;  %v2319_v17 = vor.u32 %v3290_v14, %v2318_v12 }
  0x1d   :  { %v2447_v18 = vor.u32 %v3322_v16, %v2446_v15  ;;  %v2574_v19 = vld [vmem:[#allocation6 + $0x2c0] sm:$0xf]  ;;  %v3354_v20 = vld [vmem:[#allocation6 + $0x2cc] sm:$0xf0]  ;;  %1332 = vmatpush.bf16.msra.mxu3 %v2719_v13 }
  0x1e   :  { %v2702_v21 = vld [vmem:[#allocation6 + $0x3c0] sm:$0xf]  ;;  %v2575_v22 = vor.u32 %v3354_v20, %v2574_v19  ;;  %v3386_v23 = vld [vmem:[#allocation6 + $0x3cc] sm:$0xf0]  ;;  %1294 = vmatpush.bf16.msra.mxu0 %v2319_v17 }
  0x1f   :  { %v2302_v24 = vld [vmem:[#allocation6 + $0xa0] sm:$0xf]  ;;  %v3286_v25 = vld [vmem:[#allocation6 + $0xac] sm:$0xf0]  ;;  %v2703_v26 = vor.u32 %v3386_v23, %v2702_v21  ;;  %1307 = vmatpush.bf16.msra.mxu1 %v2447_v18 }
  0x20   :  { %v2430_v27 = vld [vmem:[#allocation6 + $0x1a0] sm:$0xf]  ;;  %v3318_v28 = vld [vmem:[#allocation6 + $0x1ac] sm:$0xf0]  ;;  %v2303_v30 = vor.u32 %v3286_v25, %v2302_v24  ;;  %1320 = vmatpush.bf16.msra.mxu2 %v2575_v22 }
  0x21   :  { %v2558_v29 = vld [vmem:[#allocation6 + $0x2a0] sm:$0xf]  ;;  %v3350_v31 = vld [vmem:[#allocation6 + $0x2ac] sm:$0xf0]  ;;  %v2431_v34 = vor.u32 %v3318_v28, %v2430_v27  ;;  %1333 = vmatpush.bf16.msra.mxu3 %v2703_v26 }
  0x22   :  { %v2686_v32 = vld [vmem:[#allocation6 + $0x3a0] sm:$0xf]  ;;  %v3382_v33 = vld [vmem:[#allocation6 + $0x3ac] sm:$0xf0]  ;;  %v2559_v35 = vor.u32 %v3350_v31, %v2558_v29  ;;  %1295 = vmatpush.bf16.msra.mxu0 %v2303_v30 }
  0x23   :  { %v2286_v36 = vld [vmem:[#allocation6 + $0x80] sm:$0xf]  ;;  %v3282_v37 = vld [vmem:[#allocation6 + $0x8c] sm:$0xf0]  ;;  %v2687_v39 = vor.u32 %v3382_v33, %v2686_v32  ;;  %1308 = vmatpush.bf16.msra.mxu1 %v2431_v34  ;;  %v3292_v34 = vld [vmem:[#allocation6 + $0xe4] sm:$0xf] }
  0x24   :  { %v2414_v38 = vld [vmem:[#allocation6 + $0x180] sm:$0xf]  ;;  %v3314_v40 = vld [vmem:[#allocation6 + $0x18c] sm:$0xf0]  ;;  %v2287_v45 = vor.u32 %v3282_v37, %v2286_v36  ;;  %1321 = vmatpush.bf16.msra.mxu2 %v2559_v35  ;;  %v2336_v35 = vld [vmem:[#allocation6 + $0xf0] sm:$0xf0] }
  0x25   :  { %v2542_v41 = vld [vmem:[#allocation6 + $0x280] sm:$0xf]  ;;  %v3346_v42 = vld [vmem:[#allocation6 + $0x28c] sm:$0xf0]  ;;  %v2415_v46 = vor.u32 %v3314_v40, %v2414_v38  ;;  %1334 = vmatpush.bf16.msra.mxu3 %v2687_v39  ;;  %v91_v36 = vld [vmem:[#allocation3 + $0x10] sm:$0xff] }
  0x26   :  { %v2670_v43 = vld [vmem:[#allocation6 + $0x380] sm:$0xf]  ;;  %v3378_v44 = vld [vmem:[#allocation6 + $0x38c] sm:$0xf0]  ;;  %v2543_v47 = vor.u32 %v3346_v42, %v2542_v41  ;;  %1296 = vmatpush.bf16.msra.mxu0 %v2287_v45  ;;  %v89_v41 = vld [vmem:[#allocation3] sm:$0xff] }
  0x27   :  { %v2270_v48 = vld [vmem:[#allocation6 + $0x60] sm:$0xf]  ;;  %v3278_v49 = vld [vmem:[#allocation6 + $0x6c] sm:$0xf0]  ;;  %v2671_v51 = vor.u32 %v3378_v44, %v2670_v43  ;;  %1309 = vmatpush.bf16.msra.mxu1 %v2415_v46  ;;  %v3324_v44 = vld [vmem:[#allocation6 + $0x1e4] sm:$0xf] }
  0x28   :  { %v2398_v50 = vld [vmem:[#allocation6 + $0x160] sm:$0xf]  ;;  %v3310_v52 = vld [vmem:[#allocation6 + $0x16c] sm:$0xf0]  ;;  %v2271_v57 = vor.u32 %v3278_v49, %v2270_v48  ;;  %1322 = vmatpush.bf16.msra.mxu2 %v2543_v47  ;;  %v2464_v45 = vld [vmem:[#allocation6 + $0x1f0] sm:$0xf0]  ;;  %v2339_v48 = vor.u32 %v3292_v34, %v2336_v35 }
  0x29   :  { %v2526_v53 = vld [vmem:[#allocation6 + $0x260] sm:$0xf]  ;;  %v3342_v54 = vld [vmem:[#allocation6 + $0x26c] sm:$0xf0]  ;;  %v2399_v58 = vor.u32 %v3310_v52, %v2398_v50  ;;  %1335 = vmatpush.bf16.msra.mxu3 %v2671_v51  ;;  %v3732_v52 = vpack.c.bf16 %v91_v36, %v91_v36  ;;  %v3308_v36 = vld [vmem:[#allocation6 + $0x164] sm:$0xf] }
  0x2a   :  { %v2654_v55 = vld [vmem:[#allocation6 + $0x360] sm:$0xf]  ;;  %v3374_v56 = vld [vmem:[#allocation6 + $0x36c] sm:$0xf0]  ;;  %v2527_v59 = vor.u32 %v3342_v54, %v2526_v53  ;;  %1297 = vmatpush.bf16.msra.mxu0 %v2271_v57  ;;  %v3288_v54 = vld [vmem:[#allocation6 + $0xc4] sm:$0xf] }
  0x2b   :  { %v2254_v60 = vld [vmem:[#allocation6 + $0x40] sm:$0xf]  ;;  %v3274_v61 = vld [vmem:[#allocation6 + $0x4c] sm:$0xf0]  ;;  %v2655_v63 = vor.u32 %v3374_v56, %v2654_v55  ;;  %1310 = vmatpush.bf16.msra.mxu1 %v2399_v58  ;;  %v2320_v55 = vld [vmem:[#allocation6 + $0xd0] sm:$0xf0]  ;;  %v3734_v56 = vpack.c.bf16 %v89_v41, %v89_v41 }
  0x2c   :  { %v2382_v62 = vld [vmem:[#allocation6 + $0x140] sm:$0xf]  ;;  %v3306_v0 = vld [vmem:[#allocation6 + $0x14c] sm:$0xf0]  ;;  %v2255_v5 = vor.u32 %v3274_v61, %v2254_v60  ;;  %1323 = vmatpush.bf16.msra.mxu2 %v2527_v59  ;;  %v2467_v60 = vor.u32 %v3324_v44, %v2464_v45  ;;  %v3272_v44 = vld [vmem:[#allocation6 + $0x44] sm:$0xf] }
  0x2d   :  { %v2510_v1 = vld [vmem:[#allocation6 + $0x240] sm:$0xf]  ;;  %v3338_v2 = vld [vmem:[#allocation6 + $0x24c] sm:$0xf0]  ;;  %v2383_v6 = vor.u32 %v3306_v0, %v2382_v62  ;;  %1336 = vmatpush.bf16.msra.mxu3 %v2655_v63  ;;  %v3320_v62 = vld [vmem:[#allocation6 + $0x1c4] sm:$0xf] }
  0x2e   :  { %v2638_v3 = vld [vmem:[#allocation6 + $0x340] sm:$0xf]  ;;  %v3370_v4 = vld [vmem:[#allocation6 + $0x34c] sm:$0xf0]  ;;  %v2511_v7 = vor.u32 %v3338_v2, %v2510_v1  ;;  %1298 = vmatpush.bf16.msra.mxu0 %v2255_v5  ;;  %v2448_v63 = vld [vmem:[#allocation6 + $0x1d0] sm:$0xf0]  ;;  %v2323_v1 = vor.u32 %v3288_v54, %v2320_v55 }
  0x2f   :  { %v2238_v8 = vld [vmem:[#allocation6 + $0x20] sm:$0xf]  ;;  %v3270_v9 = vld [vmem:[#allocation6 + $0x2c] sm:$0xf0]  ;;  %v2639_v11 = vor.u32 %v3370_v4, %v2638_v3  ;;  %1311 = vmatpush.bf16.msra.mxu1 %v2383_v6  ;;  %v3284_v6 = vld [vmem:[#allocation6 + $0xa4] sm:$0xf] }
  0x30   :  { %v2366_v10 = vld [vmem:[#allocation6 + $0x120] sm:$0xf]  ;;  %v3302_v12 = vld [vmem:[#allocation6 + $0x12c] sm:$0xf0]  ;;  %v2239_v17 = vor.u32 %v3270_v9, %v2238_v8  ;;  %1324 = vmatpush.bf16.msra.mxu2 %v2511_v7  ;;  %v2304_v7 = vld [vmem:[#allocation6 + $0xb0] sm:$0xf0]  ;;  %v2451_v9 = vor.u32 %v3320_v62, %v2448_v63 }
  0x31   :  { %v2494_v13 = vld [vmem:[#allocation6 + $0x220] sm:$0xf]  ;;  %v3334_v14 = vld [vmem:[#allocation6 + $0x22c] sm:$0xf0]  ;;  %v2367_v21 = vor.u32 %v3302_v12, %v2366_v10  ;;  %1337 = vmatpush.bf16.msra.mxu3 %v2639_v11  ;;  %v3316_v11 = vld [vmem:[#allocation6 + $0x1a4] sm:$0xf] }
  0x32   :  { %v2622_v15 = vld [vmem:[#allocation6 + $0x320] sm:$0xf]  ;;  %v3366_v16 = vld [vmem:[#allocation6 + $0x32c] sm:$0xf0]  ;;  %v2495_v22 = vor.u32 %v3334_v14, %v2494_v13  ;;  %1299 = vmatpush.bf16.msra.mxu0 %v2239_v17  ;;  %v2432_v12 = vld [vmem:[#allocation6 + $0x1b0] sm:$0xf0]  ;;  %v2307_v14 = vor.u32 %v3284_v6, %v2304_v7 }
  0x33   :  { %v2222_v18 = vld [vmem:[#allocation6] sm:$0xf]  ;;  %v3266_v19 = vld [vmem:[#allocation6 + $0xc] sm:$0xf0]  ;;  %v2623_v26 = vor.u32 %v3366_v16, %v2622_v15  ;;  %1312 = vmatpush.bf16.msra.mxu1 %v2367_v21  ;;  %v2435_v21 = vor.u32 %v3316_v11, %v2432_v12  ;;  %v2256_v45 = vld [vmem:[#allocation6 + $0x50] sm:$0xf0] }
  0x34   :  { %v2350_v20 = vld [vmem:[#allocation6 + $0x100] sm:$0xf]  ;;  %v3298_v23 = vld [vmem:[#allocation6 + $0x10c] sm:$0xf0]  ;;  %v2223_v33 = vor.u32 %v3266_v19, %v2222_v18  ;;  %1325 = vmatpush.bf16.msra.mxu2 %v2495_v22  ;;  %v3280_v19 = vld [vmem:[#allocation6 + $0x84] sm:$0xf] }
  0x35   :  { %v2478_v24 = vld [vmem:[#allocation6 + $0x200] sm:$0xf]  ;;  %v3330_v25 = vld [vmem:[#allocation6 + $0x20c] sm:$0xf0]  ;;  %v2351_v37 = vor.u32 %v3298_v23, %v2350_v20  ;;  %1338 = vmatpush.bf16.msra.mxu3 %v2623_v26  ;;  %v2288_v20 = vld [vmem:[#allocation6 + $0x90] sm:$0xf0] }
  0x36   :  { %v2606_v27 = vld [vmem:[#allocation6 + $0x300] sm:$0xf]  ;;  %v3362_v28 = vld [vmem:[#allocation6 + $0x30c] sm:$0xf0]  ;;  %v2479_v38 = vor.u32 %v3330_v25, %v2478_v24  ;;  %1300 = vmatpush.bf16.msra.mxu0 %v2223_v33  ;;  %v3312_v23 = vld [vmem:[#allocation6 + $0x184] sm:$0xf]  ;;  %v2291_v26 = vor.u32 %v3280_v19, %v2288_v20 }
  0x37   :  { %v2846_v29 = vld [vmem:[#allocation6 + $0x4e0] sm:$0xf]  ;;  %v3422_v30 = vld [vmem:[#allocation6 + $0x4ec] sm:$0xf0]  ;;  %v2607_v42 = vor.u32 %v3362_v28, %v2606_v27  ;;  %1313 = vmatpush.bf16.msra.mxu1 %v2351_v37  ;;  %v2416_v24 = vld [vmem:[#allocation6 + $0x190] sm:$0xf0] }
  0x38   :  { %v2974_v31 = vld [vmem:[#allocation6 + $0x5e0] sm:$0xf]  ;;  %v3454_v32 = vld [vmem:[#allocation6 + $0x5ec] sm:$0xf0]  ;;  %v2847_v43 = vor.u32 %v3422_v30, %v2846_v29  ;;  %1326 = vmatpush.bf16.msra.mxu2 %v2479_v38  ;;  %v95_v33 = vld [vmem:[#allocation3 + $0x30] sm:$0xff]  ;;  %v2419_v34 = vor.u32 %v3312_v23, %v2416_v24 }
  0x39   :  { %v2990_v39 = vld [vmem:[#allocation6 + $0x600] sm:$0xf]  ;;  %v3458_v40 = vld [vmem:[#allocation6 + $0x60c] sm:$0xf0]  ;;  %v2975_v47 = vor.u32 %v3454_v32, %v2974_v31  ;;  %1339 = vmatpush.bf16.msra.mxu3 %v2607_v42  ;;  %1301 = vmatmul.bf16.vlgmr.msra.gmra.mxu0 %v3734_v56  ;;  %v3276_v31 = vld [vmem:[#allocation6 + $0x64] sm:$0xf] }
  0x3a   :  { %v92_v46 = vld [vmem:[#allocation3 + $0x18] sm:$0xff]  ;;  %v3418_v50 = vld [vmem:[#allocation6 + $0x4cc] sm:$0xf0]  ;;  %v2991_v57 = vor.u32 %v3458_v40, %v2990_v39  ;;  %1345 = vmatpush.bf16.msrb.mxu0 %v2847_v43  ;;  %v2272_v32 = vld [vmem:[#allocation6 + $0x70] sm:$0xf0] }
  0x3b   :  { %v2830_v49 = vld [vmem:[#allocation6 + $0x4c0] sm:$0xf]  ;;  %v3450_v53 = vld [vmem:[#allocation6 + $0x5cc] sm:$0xf0]  ;;  %v3736_v58 = vpack.c.bf16 %v92_v46, %v92_v46  ;;  %1358 = vmatpush.bf16.msrb.mxu1 %v2975_v47  ;;  %1327 = vmatmul.bf16.vlgmr.msra.gmra.mxu2 %v3732_v52  ;;  %v2400_v37 = vld [vmem:[#allocation6 + $0x170] sm:$0xf0]  ;;  %v2275_v39 = vor.u32 %v3276_v31, %v2272_v32  ;;  %v3744_v46 = vpack.c.bf16 %v95_v33, %v95_v33 }
  0x3c   :  { %v2958_v51 = vld [vmem:[#allocation6 + $0x5c0] sm:$0xf]  ;;  %v90_v59 = vld [vmem:[#allocation3 + $0x8] sm:$0xff]  ;;  %v2831_v61 = vor.u32 %v3418_v50, %v2830_v49  ;;  %1378 = vmatpush.bf16.msrb.mxu2 %v2991_v57  ;;  %v2403_v47 = vor.u32 %v3308_v36, %v2400_v37  ;;  %v3304_v49 = vld [vmem:[#allocation6 + $0x144] sm:$0xf] }
  0x3d   :  { %1384 = vmatpush.bf16.msrb.mxu3 %v2339_v48  ;;  %v2959_v0 = vor.u32 %v3450_v53, %v2958_v51  ;;  %v2814_v2 = vld [vmem:[#allocation6 + $0x4a0] sm:$0xf]  ;;  %v3414_v3 = vld [vmem:[#allocation6 + $0x4ac] sm:$0xf0]  ;;  %v3740_v8 = vpack.c.bf16 %v90_v59, %v90_v59  ;;  %v2384_v50 = vld [vmem:[#allocation6 + $0x150] sm:$0xf0]  ;;  %v2259_v53 = vor.u32 %v3272_v44, %v2256_v45 }
  0x3e   :  { %v2942_v4 = vld [vmem:[#allocation6 + $0x5a0] sm:$0xf]  ;;  %v3446_v5 = vld [vmem:[#allocation6 + $0x5ac] sm:$0xf0]  ;;  %1340 = vmatmul.bf16.vlgmr.msra.gmra.mxu3 %v3736_v58  ;;  %1346 = vmatpush.bf16.msrb.mxu0 %v2831_v61  ;;  %v2815_v10 = vor.u32 %v3414_v3, %v2814_v2  ;;  %v2240_v61 = vld [vmem:[#allocation6 + $0x30] sm:$0xf0]  ;;  %v2387_v62 = vor.u32 %v3304_v49, %v2384_v50 }
  0x3f   :  { %1359 = vmatpush.bf16.msrb.mxu1 %v2959_v0  ;;  %v2943_v13 = vor.u32 %v3446_v5, %v2942_v4  ;;  %v2798_v15 = vld [vmem:[#allocation6 + $0x480] sm:$0xf]  ;;  %v3410_v16 = vld [vmem:[#allocation6 + $0x48c] sm:$0xf0]  ;;  %v3300_v0 = vld [vmem:[#allocation6 + $0x124] sm:$0xf] }
  0x40   :  { %1397 = vmatpush.bf16.msra.mxu2 %v2467_v60  ;;  %v2926_v17 = vld [vmem:[#allocation6 + $0x580] sm:$0xf]  ;;  %1314 = vmatmul.bf16.vlgmr.msra.gmra.mxu1 %v3740_v8  ;;  %v3442_v18 = vld [vmem:[#allocation6 + $0x58c] sm:$0xf0]  ;;  %v2799_v22 = vor.u32 %v3410_v16, %v2798_v15  ;;  %v3268_v60 = vld [vmem:[#allocation6 + $0x24] sm:$0xf] }
  0x41   :  { %1385 = vmatpush.bf16.msrb.mxu3 %v2323_v1  ;;  %v2927_v25 = vor.u32 %v3442_v18, %v2926_v17  ;;  %v2782_v27 = vld [vmem:[#allocation6 + $0x460] sm:$0xf]  ;;  %v3406_v28 = vld [vmem:[#allocation6 + $0x46c] sm:$0xf0]  ;;  %v2368_v1 = vld [vmem:[#allocation6 + $0x130] sm:$0xf0]  ;;  %v2243_v4 = vor.u32 %v3268_v60, %v2240_v61 }
  0x42   :  { %1347 = vmatpush.bf16.msrb.mxu0 %v2815_v10  ;;  %v2910_v29 = vld [vmem:[#allocation6 + $0x560] sm:$0xf]  ;;  %v3438_v30 = vld [vmem:[#allocation6 + $0x56c] sm:$0xf0]  ;;  %v2783_v35 = vor.u32 %v3406_v28, %v2782_v27  ;;  %v2224_v10 = vld [vmem:[#allocation6 + $0x10] sm:$0xf0]  ;;  %v2371_v15 = vor.u32 %v3300_v0, %v2368_v1 }
  0x43   :  { %1360 = vmatpush.bf16.msrb.mxu1 %v2943_v13  ;;  %v2911_v38 = vor.u32 %v3438_v30, %v2910_v29  ;;  %v2766_v40 = vld [vmem:[#allocation6 + $0x440] sm:$0xf]  ;;  %v3402_v41 = vld [vmem:[#allocation6 + $0x44c] sm:$0xf0]  ;;  %v3356_v11 = vld [vmem:[#allocation6 + $0x2e4] sm:$0xf] }
  0x44   :  { %1398 = vmatpush.bf16.msra.mxu2 %v2451_v9  ;;  %v2894_v42 = vld [vmem:[#allocation6 + $0x540] sm:$0xf]  ;;  %v3434_v43 = vld [vmem:[#allocation6 + $0x54c] sm:$0xf0]  ;;  %v2767_v48 = vor.u32 %v3402_v41, %v2766_v40  ;;  %v3264_v9 = vld [vmem:[#allocation6 + $0x4] sm:$0xf] }
  0x45   :  { %1386 = vmatpush.bf16.msrb.mxu3 %v2307_v14  ;;  %v2895_v51 = vor.u32 %v3434_v43, %v2894_v42  ;;  %v2750_v54 = vld [vmem:[#allocation6 + $0x420] sm:$0xf]  ;;  %v3398_v55 = vld [vmem:[#allocation6 + $0x42c] sm:$0xf0]  ;;  %v2592_v12 = vld [vmem:[#allocation6 + $0x2f0] sm:$0xf0] }
  0x46   :  { %1348 = vmatpush.bf16.msrb.mxu0 %v2799_v22  ;;  %v2878_v57 = vld [vmem:[#allocation6 + $0x520] sm:$0xf]  ;;  %v3430_v59 = vld [vmem:[#allocation6 + $0x52c] sm:$0xf0]  ;;  %v2751_v63 = vor.u32 %v3398_v55, %v2750_v54  ;;  %v3388_v13 = vld [vmem:[#allocation6 + $0x3e4] sm:$0xf] }
  0x47   :  { %1361 = vmatpush.bf16.msrb.mxu1 %v2927_v25  ;;  %v2734_v2 = vld [vmem:[#allocation6 + $0x400] sm:$0xf]  ;;  %v2879_v3 = vor.u32 %v3430_v59, %v2878_v57  ;;  %v3394_v5 = vld [vmem:[#allocation6 + $0x40c] sm:$0xf0]  ;;  %v2720_v14 = vld [vmem:[#allocation6 + $0x3f0] sm:$0xf0]  ;;  %v2595_v25 = vor.u32 %v3356_v11, %v2592_v12 }
  0x48   :  { %1399 = vmatpush.bf16.msra.mxu2 %v2435_v21  ;;  %v2862_v6 = vld [vmem:[#allocation6 + $0x500] sm:$0xf]  ;;  %v3426_v7 = vld [vmem:[#allocation6 + $0x50c] sm:$0xf0]  ;;  %v2735_v16 = vor.u32 %v3394_v5, %v2734_v2  ;;  %v3420_v17 = vld [vmem:[#allocation6 + $0x4e4] sm:$0xf]  ;;  %v2227_v21 = vor.u32 %v3264_v9, %v2224_v10 }
  0x49   :  { %1387 = vmatpush.bf16.msrb.mxu3 %v2291_v26  ;;  %v2848_v18 = vld [vmem:[#allocation6 + $0x4f0] sm:$0xf0]  ;;  %v93_v19 = vld [vmem:[#allocation3 + $0x20] sm:$0xff]  ;;  %v2863_v20 = vor.u32 %v3426_v7, %v2862_v6  ;;  %v3296_v22 = vld [vmem:[#allocation6 + $0x104] sm:$0xf]  ;;  %v2723_v26 = vor.u32 %v3388_v13, %v2720_v14 }
  0x4a   :  { %1349 = vmatpush.bf16.msrb.mxu0 %v2783_v35  ;;  %v2352_v23 = vld [vmem:[#allocation6 + $0x110] sm:$0xf0]  ;;  %v3452_v27 = vld [vmem:[#allocation6 + $0x5e4] sm:$0xf]  ;;  %v2851_v30 = vor.u32 %v3420_v17, %v2848_v18  ;;  %v3748_v31 = vpack.c.bf16 %v93_v19, %v93_v19 }
  0x4b   :  { %1362 = vmatpush.bf16.msrb.mxu1 %v2911_v38  ;;  %3004 = vmatmul.msk.bf16.vlgmr.msrb.gmra.mxu2 %vm1289_vm0, %v3744_v46  ;;  %v94_v24 = vld [vmem:[#allocation3 + $0x28] sm:$0xff]  ;;  %v3352_v29 = vld [vmem:[#allocation6 + $0x2c4] sm:$0xf]  ;;  %v2355_v35 = vor.u32 %v3296_v22, %v2352_v23 }
  0x4c   :  { %1400 = vmatpush.bf16.msra.mxu2 %v2419_v34  ;;  %v2976_v28 = vld [vmem:[#allocation6 + $0x5f0] sm:$0xf0]  ;;  %v3384_v33 = vld [vmem:[#allocation6 + $0x3c4] sm:$0xf]  ;;  %v3750_v36 = vpack.c.bf16 %v94_v24, %v94_v24 }
  0x4d   :  { %1388 = vmatpush.bf16.msrb.mxu3 %v2275_v39  ;;  %v2576_v32 = vld [vmem:[#allocation6 + $0x2d0] sm:$0xf0]  ;;  %v3416_v37 = vld [vmem:[#allocation6 + $0x4c4] sm:$0xf]  ;;  %v2979_v39 = vor.u32 %v3452_v27, %v2976_v28 }
  0x4e   :  { %1350 = vmatpush.bf16.msrb.mxu0 %v2767_v48  ;;  %v2704_v34 = vld [vmem:[#allocation6 + $0x3d0] sm:$0xf0]  ;;  %v2579_v40 = vor.u32 %v3352_v29, %v2576_v32  ;;  %v3448_v42 = vld [vmem:[#allocation6 + $0x5c4] sm:$0xf] }
  0x4f   :  { %1363 = vmatpush.bf16.msrb.mxu1 %v2895_v51  ;;  %v2832_v38 = vld [vmem:[#allocation6 + $0x4d0] sm:$0xf0]  ;;  %v2707_v41 = vor.u32 %v3384_v33, %v2704_v34  ;;  %v3348_v44 = vld [vmem:[#allocation6 + $0x2a4] sm:$0xf] }
  0x50   :  { %1401 = vmatpush.bf16.msra.mxu2 %v2403_v47  ;;  %v2960_v43 = vld [vmem:[#allocation6 + $0x5d0] sm:$0xf0]  ;;  %v2835_v45 = vor.u32 %v3416_v37, %v2832_v38  ;;  %v3380_v48 = vld [vmem:[#allocation6 + $0x3a4] sm:$0xf] }
  0x51   :  { %1389 = vmatpush.bf16.msrb.mxu3 %v2259_v53  ;;  %v2560_v47 = vld [vmem:[#allocation6 + $0x2b0] sm:$0xf0]  ;;  %v3412_v50 = vld [vmem:[#allocation6 + $0x4a4] sm:$0xf]  ;;  %v2963_v53 = vor.u32 %v3448_v42, %v2960_v43 }
  0x52   :  { %1351 = vmatpush.bf16.msrb.mxu0 %v2751_v63  ;;  %v2688_v49 = vld [vmem:[#allocation6 + $0x3b0] sm:$0xf0]  ;;  %v2563_v54 = vor.u32 %v3348_v44, %v2560_v47  ;;  %v3444_v57 = vld [vmem:[#allocation6 + $0x5a4] sm:$0xf] }
  0x53   :  { %1364 = vmatpush.bf16.msrb.mxu1 %v2879_v3  ;;  %v2816_v51 = vld [vmem:[#allocation6 + $0x4b0] sm:$0xf0]  ;;  %v2691_v55 = vor.u32 %v3380_v48, %v2688_v49  ;;  %v3344_v60 = vld [vmem:[#allocation6 + $0x284] sm:$0xf] }
  0x54   :  { %1402 = vmatpush.bf16.msra.mxu2 %v2387_v62  ;;  %v2944_v59 = vld [vmem:[#allocation6 + $0x5b0] sm:$0xf0]  ;;  %v2819_v61 = vor.u32 %v3412_v50, %v2816_v51  ;;  %v3376_v63 = vld [vmem:[#allocation6 + $0x384] sm:$0xf] }
  0x55   :  { %1390 = vmatpush.bf16.msrb.mxu3 %v2243_v4  ;;  %v2544_v62 = vld [vmem:[#allocation6 + $0x290] sm:$0xf0]  ;;  %v3408_v1 = vld [vmem:[#allocation6 + $0x484] sm:$0xf]  ;;  %v2947_v3 = vor.u32 %v3444_v57, %v2944_v59  ;;  %v2342_v57 = vld [vmem:[#allocation6 + $0xe8] sm:$0xf] }
  0x56   :  { %1352 = vmatpush.bf16.msrb.mxu0 %v2735_v16  ;;  %v2672_v0 = vld [vmem:[#allocation6 + $0x390] sm:$0xf0]  ;;  %v2547_v4 = vor.u32 %v3344_v60, %v2544_v62  ;;  %v3440_v6 = vld [vmem:[#allocation6 + $0x584] sm:$0xf]  ;;  %v3295_v59 = vld [vmem:[#allocation6 + $0xf4] sm:$0xf0] }
  0x57   :  { %1365 = vmatpush.bf16.msrb.mxu1 %v2863_v20  ;;  %v2800_v2 = vld [vmem:[#allocation6 + $0x490] sm:$0xf0]  ;;  %v2675_v5 = vor.u32 %v3376_v63, %v2672_v0  ;;  %v3340_v9 = vld [vmem:[#allocation6 + $0x264] sm:$0xf]  ;;  %v2598_v63 = vld [vmem:[#allocation6 + $0x2e8] sm:$0xf] }
  0x58   :  { %1403 = vmatpush.bf16.msra.mxu2 %v2371_v15  ;;  %v2928_v7 = vld [vmem:[#allocation6 + $0x590] sm:$0xf0]  ;;  %v2803_v10 = vor.u32 %v3408_v1, %v2800_v2  ;;  %v3372_v12 = vld [vmem:[#allocation6 + $0x364] sm:$0xf]  ;;  %v3359_v0 = vld [vmem:[#allocation6 + $0x2f4] sm:$0xf0] }
  0x59   :  { %1391 = vmatpush.bf16.msrb.mxu3 %v2227_v21  ;;  %1353 = vmatmul.bf16.vlgmr.msrb.gmra.mxu0 %v3748_v31  ;;  %v2528_v11 = vld [vmem:[#allocation6 + $0x270] sm:$0xf0]  ;;  %v3404_v14 = vld [vmem:[#allocation6 + $0x464] sm:$0xf]  ;;  %v2931_v16 = vor.u32 %v3440_v6, %v2928_v7  ;;  %v2343_v6 = vor.u32 %v3295_v59, %v2342_v57  ;;  %v2726_v7 = vld [vmem:[#allocation6 + $0x3e8] sm:$0xf] }
  0x5a   :  { %1410 = vmatpush.bf16.msra.mxu0 %v2595_v25  ;;  %1366 = vmatmul.bf16.vlgmr.msrb.gmra.mxu1 %v3750_v36  ;;  %v2656_v13 = vld [vmem:[#allocation6 + $0x370] sm:$0xf0]  ;;  %v2531_v17 = vor.u32 %v3340_v9, %v2528_v11  ;;  %v3436_v19 = vld [vmem:[#allocation6 + $0x564] sm:$0xf]  ;;  %v3391_v9 = vld [vmem:[#allocation6 + $0x3f4] sm:$0xf0] }
  0x5b   :  { %1423 = vmatpush.bf16.msra.mxu1 %v2723_v26  ;;  %v2784_v15 = vld [vmem:[#allocation6 + $0x470] sm:$0xf0]  ;;  %v2659_v18 = vor.u32 %v3372_v12, %v2656_v13  ;;  %v3336_v21 = vld [vmem:[#allocation6 + $0x244] sm:$0xf]  ;;  %v2470_v11 = vld [vmem:[#allocation6 + $0x1e8] sm:$0xf]  ;;  %v2599_v13 = vor.u32 %v3359_v0, %v2598_v63 }
  0x5c   :  { %1404 = vmatpush.bf16.msra.mxu2 %v2355_v35  ;;  %1392 = vmatmul.bf16.vlgmr.msrb.gmra.mxu3 %v3734_v56  ;;  %v2912_v20 = vld [vmem:[#allocation6 + $0x570] sm:$0xf0]  ;;  %v2787_v22 = vor.u32 %v3404_v14, %v2784_v15  ;;  %v3368_v24 = vld [vmem:[#allocation6 + $0x344] sm:$0xf]  ;;  %v3327_v12 = vld [vmem:[#allocation6 + $0x1f4] sm:$0xf0] }
  0x5d   :  { %1436 = vmatpush.bf16.msra.mxu3 %v2851_v30  ;;  %v2512_v23 = vld [vmem:[#allocation6 + $0x250] sm:$0xf0]  ;;  %v3400_v26 = vld [vmem:[#allocation6 + $0x444] sm:$0xf]  ;;  %v2915_v28 = vor.u32 %v3436_v19, %v2912_v20  ;;  %v2326_v15 = vld [vmem:[#allocation6 + $0xc8] sm:$0xf]  ;;  %v2471_v20 = vor.u32 %v3327_v12, %v2470_v11 }
  0x5e   :  { %1411 = vmatpush.bf16.msra.mxu0 %v2579_v40  ;;  %v2640_v25 = vld [vmem:[#allocation6 + $0x350] sm:$0xf0]  ;;  %v2515_v29 = vor.u32 %v3336_v21, %v2512_v23  ;;  %v3432_v32 = vld [vmem:[#allocation6 + $0x544] sm:$0xf]  ;;  %v3355_v19 = vld [vmem:[#allocation6 + $0x2d4] sm:$0xf0] }
  0x5f   :  { %1424 = vmatpush.bf16.msra.mxu1 %v2707_v41  ;;  %1405 = vmatmul.bf16.vlgmr.msra.gmra.mxu2 %v3740_v8  ;;  %v2768_v27 = vld [vmem:[#allocation6 + $0x450] sm:$0xf0]  ;;  %v2643_v30 = vor.u32 %v3368_v24, %v2640_v25  ;;  %v3332_v34 = vld [vmem:[#allocation6 + $0x224] sm:$0xf]  ;;  %v2710_v21 = vld [vmem:[#allocation6 + $0x3c8] sm:$0xf] }
  0x60   :  { %1449 = vmatpush.bf16.msrb.mxu2 %v2979_v39  ;;  %v2896_v33 = vld [vmem:[#allocation6 + $0x550] sm:$0xf0]  ;;  %v2771_v35 = vor.u32 %v3400_v26, %v2768_v27  ;;  %v3364_v38 = vld [vmem:[#allocation6 + $0x324] sm:$0xf]  ;;  %v2454_v24 = vld [vmem:[#allocation6 + $0x1c8] sm:$0xf] }
  0x61   :  { %1437 = vmatpush.bf16.msra.mxu3 %v2835_v45  ;;  %v2496_v37 = vld [vmem:[#allocation6 + $0x230] sm:$0xf0]  ;;  %v3396_v40 = vld [vmem:[#allocation6 + $0x424] sm:$0xf]  ;;  %v2899_v42 = vor.u32 %v3432_v32, %v2896_v33  ;;  %v3323_v25 = vld [vmem:[#allocation6 + $0x1d4] sm:$0xf0] }
  0x62   :  { %1412 = vmatpush.bf16.msra.mxu0 %v2563_v54  ;;  %v2624_v39 = vld [vmem:[#allocation6 + $0x330] sm:$0xf0]  ;;  %v3428_v43 = vld [vmem:[#allocation6 + $0x524] sm:$0xf]  ;;  %v2499_v45 = vor.u32 %v3332_v34, %v2496_v37  ;;  %v2310_v27 = vld [vmem:[#allocation6 + $0xa8] sm:$0xf]  ;;  %v2455_v33 = vor.u32 %v3323_v25, %v2454_v24 }
  0x63   :  { %1425 = vmatpush.bf16.msra.mxu1 %v2691_v55  ;;  %v2752_v41 = vld [vmem:[#allocation6 + $0x430] sm:$0xf0]  ;;  %v2627_v47 = vor.u32 %v3364_v38, %v2624_v39  ;;  %v3328_v48 = vld [vmem:[#allocation6 + $0x204] sm:$0xf]  ;;  %v3351_v32 = vld [vmem:[#allocation6 + $0x2b4] sm:$0xf0] }
  0x64   :  { %1450 = vmatpush.bf16.msrb.mxu2 %v2963_v53  ;;  %v2880_v44 = vld [vmem:[#allocation6 + $0x530] sm:$0xf0]  ;;  %v3360_v50 = vld [vmem:[#allocation6 + $0x304] sm:$0xf]  ;;  %v2755_v51 = vor.u32 %v3396_v40, %v2752_v41  ;;  %v2694_v34 = vld [vmem:[#allocation6 + $0x3a8] sm:$0xf] }
  0x65   :  { %1438 = vmatpush.bf16.msra.mxu3 %v2819_v61  ;;  %v2480_v49 = vld [vmem:[#allocation6 + $0x210] sm:$0xf0]  ;;  %v3392_v54 = vld [vmem:[#allocation6 + $0x404] sm:$0xf]  ;;  %v2883_v61 = vor.u32 %v3428_v43, %v2880_v44  ;;  %v2438_v38 = vld [vmem:[#allocation6 + $0x1a8] sm:$0xf] }
  0x66   :  { %1413 = vmatpush.bf16.msra.mxu0 %v2547_v4  ;;  %v2608_v53 = vld [vmem:[#allocation6 + $0x310] sm:$0xf0]  ;;  %v3456_v60 = vld [vmem:[#allocation6 + $0x604] sm:$0xf]  ;;  %v2483_v1 = vor.u32 %v3328_v48, %v2480_v49  ;;  %v3319_v39 = vld [vmem:[#allocation6 + $0x1b4] sm:$0xf0] }
  0x67   :  { %1426 = vmatpush.bf16.msra.mxu1 %v2675_v5  ;;  %v2736_v55 = vld [vmem:[#allocation6 + $0x410] sm:$0xf0]  ;;  %v2611_v2 = vor.u32 %v3360_v50, %v2608_v53  ;;  %v2294_v41 = vld [vmem:[#allocation6 + $0x88] sm:$0xf]  ;;  %v3379_v49 = vld [vmem:[#allocation6 + $0x394] sm:$0xf0] }
  0x68   :  { %1451 = vmatpush.bf16.msrb.mxu2 %v2947_v3  ;;  %v2992_v62 = vld [vmem:[#allocation6 + $0x610] sm:$0xf0]  ;;  %v3424_v3 = vld [vmem:[#allocation6 + $0x504] sm:$0xf]  ;;  %v2739_v5 = vor.u32 %v3392_v54, %v2736_v55  ;;  %v2550_v44 = vld [vmem:[#allocation6 + $0x288] sm:$0xf] }
  0x69   :  { %1439 = vmatpush.bf16.msra.mxu3 %v2803_v10  ;;  %v2864_v4 = vld [vmem:[#allocation6 + $0x510] sm:$0xf0]  ;;  %v2995_v10 = vor.u32 %v3456_v60, %v2992_v62  ;;  %v2678_v48 = vld [vmem:[#allocation6 + $0x388] sm:$0xf]  ;;  %v3315_v53 = vld [vmem:[#allocation6 + $0x194] sm:$0xf0] }
  0x6a   :  { %1414 = vmatpush.bf16.msra.mxu0 %v2531_v17  ;;  %v2867_v14 = vor.u32 %v3424_v3, %v2864_v4  ;;  %v2727_v17 = vor.u32 %v3391_v9, %v2726_v7  ;;  %v2278_v55 = vld [vmem:[#allocation6 + $0x68] sm:$0xf]  ;;  %v3279_v57 = vld [vmem:[#allocation6 + $0x74] sm:$0xf0]  ;;  %v2679_v59 = vor.u32 %v3379_v49, %v2678_v48  ;;  %v3293_v48 = vld [vmem:[#allocation6 + $0xec] sm:$0xf] }
  0x6b   :  { %1427 = vmatpush.bf16.msra.mxu1 %v2659_v18  ;;  %v2582_v18 = vld [vmem:[#allocation6 + $0x2c8] sm:$0xf]  ;;  %v3375_v0 = vld [vmem:[#allocation6 + $0x374] sm:$0xf0]  ;;  %v2344_v49 = vld [vmem:[#allocation6 + $0xf8] sm:$0xf0] }
  0x6c   :  { %1452 = vmatpush.bf16.msrb.mxu2 %v2931_v16  ;;  %v3291_v16 = vld [vmem:[#allocation6 + $0xd4] sm:$0xf0]  ;;  %v2583_v26 = vor.u32 %v3355_v19, %v2582_v18  ;;  %v2534_v60 = vld [vmem:[#allocation6 + $0x268] sm:$0xf] }
  0x6d   :  { %1440 = vmatpush.bf16.msra.mxu3 %v2787_v22  ;;  %v3387_v22 = vld [vmem:[#allocation6 + $0x3d4] sm:$0xf0]  ;;  %v2327_v23 = vor.u32 %v3291_v16, %v2326_v15  ;;  %v2662_v63 = vld [vmem:[#allocation6 + $0x368] sm:$0xf] }
  0x6e   :  { %1415 = vmatpush.bf16.msra.mxu0 %v2515_v29  ;;  %v2711_v29 = vor.u32 %v3387_v22, %v2710_v21  ;;  %v3311_v3 = vld [vmem:[#allocation6 + $0x174] sm:$0xf0]  ;;  %v2663_v7 = vor.u32 %v3375_v0, %v2662_v63  ;;  %v2518_v9 = vld [vmem:[#allocation6 + $0x248] sm:$0xf]  ;;  %v2347_v0 = vor.u32 %v3293_v48, %v2344_v49 }
  0x6f   :  { %1428 = vmatpush.bf16.msra.mxu1 %v2643_v30  ;;  %v2566_v30 = vld [vmem:[#allocation6 + $0x2a8] sm:$0xf]  ;;  %v3307_v16 = vld [vmem:[#allocation6 + $0x154] sm:$0xf0] }
  0x70   :  { %1453 = vmatpush.bf16.msrb.mxu2 %v2915_v28  ;;  %v3287_v28 = vld [vmem:[#allocation6 + $0xb4] sm:$0xf0]  ;;  %v2567_v40 = vor.u32 %v3351_v32, %v2566_v30  ;;  %v2646_v12 = vld [vmem:[#allocation6 + $0x348] sm:$0xf] }
  0x71   :  { %1441 = vmatpush.bf16.msra.mxu3 %v2771_v35  ;;  %v3383_v35 = vld [vmem:[#allocation6 + $0x3b4] sm:$0xf0]  ;;  %v2311_v37 = vor.u32 %v3287_v28, %v2310_v27  ;;  %v2390_v15 = vld [vmem:[#allocation6 + $0x148] sm:$0xf] }
  0x72   :  { %1416 = vmatpush.bf16.msra.mxu0 %v2499_v45  ;;  %v2695_v43 = vor.u32 %v3383_v35, %v2694_v34  ;;  %v3347_v45 = vld [vmem:[#allocation6 + $0x294] sm:$0xf0]  ;;  %v2246_v18 = vld [vmem:[#allocation6 + $0x28] sm:$0xf] }
  0x73   :  { %1429 = vmatpush.bf16.msra.mxu1 %v2627_v47  ;;  %v2439_v47 = vor.u32 %v3319_v39, %v2438_v38  ;;  %v2551_v54 = vor.u32 %v3347_v45, %v2550_v44  ;;  %v3271_v19 = vld [vmem:[#allocation6 + $0x34] sm:$0xf0]  ;;  %v2502_v21 = vld [vmem:[#allocation6 + $0x228] sm:$0xf] }
  0x74   :  { %1454 = vmatpush.bf16.msrb.mxu2 %v2899_v42  ;;  %v3283_v42 = vld [vmem:[#allocation6 + $0x94] sm:$0xf0]  ;;  %v2630_v24 = vld [vmem:[#allocation6 + $0x328] sm:$0xf] }
  0x75   :  { %1442 = vmatpush.bf16.msra.mxu3 %v2755_v51  ;;  %v2295_v50 = vor.u32 %v3283_v42, %v2294_v41  ;;  %v2422_v51 = vld [vmem:[#allocation6 + $0x188] sm:$0xf]  ;;  %v3335_v22 = vld [vmem:[#allocation6 + $0x234] sm:$0xf0] }
  0x76   :  { %1417 = vmatpush.bf16.msra.mxu0 %v2483_v1  ;;  %v2423_v62 = vor.u32 %v3315_v53, %v2422_v51  ;;  %v2279_v1 = vor.u32 %v3279_v57, %v2278_v55  ;;  %v3367_v25 = vld [vmem:[#allocation6 + $0x334] sm:$0xf0]  ;;  %v2374_v27 = vld [vmem:[#allocation6 + $0x128] sm:$0xf]  ;;  %v2503_v30 = vor.u32 %v3335_v22, %v2502_v21 }
  0x77   :  { %1430 = vmatpush.bf16.msra.mxu1 %v2611_v2  ;;  %v2406_v2 = vld [vmem:[#allocation6 + $0x168] sm:$0xf]  ;;  %v3303_v28 = vld [vmem:[#allocation6 + $0x134] sm:$0xf0]  ;;  %v2631_v35 = vor.u32 %v3367_v25, %v2630_v24  ;;  %v2440_v24 = vld [vmem:[#allocation6 + $0x1b8] sm:$0xf0] }
  0x78   :  { %1455 = vmatpush.bf16.msrb.mxu2 %v2883_v61  ;;  %v3343_v61 = vld [vmem:[#allocation6 + $0x274] sm:$0xf0]  ;;  %v2407_v11 = vor.u32 %v3311_v3, %v2406_v2  ;;  %v2486_v38 = vld [vmem:[#allocation6 + $0x208] sm:$0xf]  ;;  %v2375_v41 = vor.u32 %v3303_v28, %v2374_v27  ;;  %v3289_v2 = vld [vmem:[#allocation6 + $0xcc] sm:$0xf] }
  0x79   :  { %1443 = vmatpush.bf16.msra.mxu3 %v2739_v5  ;;  %1418 = vmatmul.bf16.vlgmr.msra.gmra.mxu0 %v3732_v52  ;;  %v2535_v4 = vor.u32 %v3343_v61, %v2534_v60  ;;  %v2262_v5 = vld [vmem:[#allocation6 + $0x48] sm:$0xf]  ;;  %v3267_v32 = vld [vmem:[#allocation6 + $0x14] sm:$0xf0]  ;;  %v3325_v61 = vld [vmem:[#allocation6 + $0x1ec] sm:$0xf] }
  0x7a   :  { %1501 = vmatpush.bf16.msrb.mxu0 %v2599_v13  ;;  %1431 = vmatmul.bf16.vlgmr.msra.gmra.mxu1 %v3736_v58  ;;  %v3371_v13 = vld [vmem:[#allocation6 + $0x354] sm:$0xf0]  ;;  %v2982_v53 = vld [vmem:[#allocation6 + $0x5e8] sm:$0xf]  ;;  %v2328_v3 = vld [vmem:[#allocation6 + $0xd8] sm:$0xf0] }
  0x7b   :  { %1475 = vmatpush.bf16.msrb.mxu1 %v2343_v6  ;;  %v3275_v6 = vld [vmem:[#allocation6 + $0x54] sm:$0xf0]  ;;  %v2838_v55 = vld [vmem:[#allocation6 + $0x4c8] sm:$0xf]  ;;  %v3281_v27 = vld [vmem:[#allocation6 + $0x8c] sm:$0xf] }
  0x7c   :  { %1456 = vmatpush.bf16.msrb.mxu2 %v2867_v14  ;;  %1444 = vmatmul.bf16.vlgmr.msra.gmra.mxu3 %v3748_v31  ;;  %v2263_v14 = vor.u32 %v3275_v6, %v2262_v5  ;;  %v3423_v34 = vld [vmem:[#allocation6 + $0x4f4] sm:$0xf0]  ;;  %v2966_v6 = vld [vmem:[#allocation6 + $0x5c8] sm:$0xf]  ;;  %v2296_v28 = vld [vmem:[#allocation6 + $0x98] sm:$0xf0] }
  0x7d   :  { %1469 = vmatpush.bf16.msrb.mxu3 %v2995_v10  ;;  %v3339_v10 = vld [vmem:[#allocation6 + $0x254] sm:$0xf0]  ;;  %v2806_v21 = vld [vmem:[#allocation6 + $0x488] sm:$0xf] }
  0x7e   :  { %1502 = vmatpush.bf16.msrb.mxu0 %v2583_v26  ;;  %v2247_v26 = vor.u32 %v3271_v19, %v2246_v18  ;;  %v3331_v39 = vld [vmem:[#allocation6 + $0x214] sm:$0xf0]  ;;  %v2950_v19 = vld [vmem:[#allocation6 + $0x5a8] sm:$0xf] }
  0x7f   :  { %1476 = vmatpush.bf16.msrb.mxu1 %v2327_v23  ;;  %1457 = vmatmul.bf16.vlgmr.msrb.gmra.mxu2 %v3750_v36  ;;  %v2391_v23 = vor.u32 %v3307_v16, %v2390_v15  ;;  %v3363_v42 = vld [vmem:[#allocation6 + $0x314] sm:$0xf0]  ;;  %v2487_v51 = vor.u32 %v3331_v39, %v2486_v38  ;;  %v3285_v15 = vld [vmem:[#allocation6 + $0xac] sm:$0xf]  ;;  %v2312_v16 = vld [vmem:[#allocation6 + $0xb8] sm:$0xf0]  ;;  %v2299_v39 = vor.u32 %v3281_v27, %v2296_v28 }
  0x80   :  { %1514 = vmatpush.bf16.msra.mxu2 %v2727_v17  ;;  %v2519_v17 = vor.u32 %v3339_v10, %v2518_v9  ;;  %v3459_v44 = vld [vmem:[#allocation6 + $0x614] sm:$0xf0]  ;;  %v2822_v9 = vld [vmem:[#allocation6 + $0x4a8] sm:$0xf]  ;;  %v2315_v25 = vor.u32 %v3285_v15, %v2312_v16  ;;  %v2424_v38 = vld [vmem:[#allocation6 + $0x198] sm:$0xf0] }
  0x81   :  { %1488 = vmatpush.bf16.msra.mxu3 %v2471_v20  ;;  %v2647_v20 = vor.u32 %v3371_v13, %v2646_v12  ;;  %v3415_v10 = vld [vmem:[#allocation6 + $0x4b4] sm:$0xf0]  ;;  %v2456_v12 = vld [vmem:[#allocation6 + $0x1d8] sm:$0xf0]  ;;  %v2331_v13 = vor.u32 %v3289_v2, %v2328_v3  ;;  %v2774_v48 = vld [vmem:[#allocation6 + $0x448] sm:$0xf] }
  0x82   :  { %1503 = vmatpush.bf16.msrb.mxu0 %v2567_v40  ;;  %v2614_v40 = vld [vmem:[#allocation6 + $0x308] sm:$0xf]  ;;  %v3411_v22 = vld [vmem:[#allocation6 + $0x494] sm:$0xf0]  ;;  %v2392_v2 = vld [vmem:[#allocation6 + $0x158] sm:$0xf0] }
  0x83   :  { %1477 = vmatpush.bf16.msrb.mxu1 %v2311_v37  ;;  %v2358_v37 = vld [vmem:[#allocation6 + $0x108] sm:$0xf]  ;;  %v2615_v57 = vor.u32 %v3363_v42, %v2614_v40  ;;  %v2280_v42 = vld [vmem:[#allocation6 + $0x78] sm:$0xf0]  ;;  %v3403_v49 = vld [vmem:[#allocation6 + $0x454] sm:$0xf0] }
  0x84   :  { %1515 = vmatpush.bf16.msra.mxu2 %v2711_v29  ;;  %v2230_v29 = vld [vmem:[#allocation6 + $0x8] sm:$0xf]  ;;  %v2376_v15 = vld [vmem:[#allocation6 + $0x138] sm:$0xf0] }
  0x85   :  { %1489 = vmatpush.bf16.msra.mxu3 %v2455_v33  ;;  %v2854_v33 = vld [vmem:[#allocation6 + $0x4e8] sm:$0xf]  ;;  %v2231_v45 = vor.u32 %v3267_v32, %v2230_v29  ;;  %v2807_v29 = vor.u32 %v3411_v22, %v2806_v21  ;;  %v3265_v21 = vld [vmem:[#allocation6 + $0xc] sm:$0xf]  ;;  %v2232_v22 = vld [vmem:[#allocation6 + $0x18] sm:$0xf0] }
  0x86   :  { %1504 = vmatpush.bf16.msrb.mxu0 %v2551_v54  ;;  %v3455_v54 = vld [vmem:[#allocation6 + $0x5f4] sm:$0xf0]  ;;  %v2934_v32 = vld [vmem:[#allocation6 + $0x588] sm:$0xf]  ;;  %v2728_v27 = vld [vmem:[#allocation6 + $0x3f8] sm:$0xf0] }
  0x87   :  { %1478 = vmatpush.bf16.msrb.mxu1 %v2295_v50  ;;  %v2855_v50 = vor.u32 %v3423_v34, %v2854_v33  ;;  %v3443_v33 = vld [vmem:[#allocation6 + $0x594] sm:$0xf0]  ;;  %v2790_v34 = vld [vmem:[#allocation6 + $0x468] sm:$0xf] }
  0x88   :  { %1516 = vmatpush.bf16.msra.mxu2 %v2695_v43  ;;  %v2998_v43 = vld [vmem:[#allocation6 + $0x608] sm:$0xf]  ;;  %v2935_v40 = vor.u32 %v3443_v33, %v2934_v32  ;;  %v3353_v32 = vld [vmem:[#allocation6 + $0x2cc] sm:$0xf]  ;;  %v2235_v33 = vor.u32 %v3265_v21, %v2232_v22 }
  0x89   :  { %1490 = vmatpush.bf16.msra.mxu3 %v2439_v47  ;;  %v3299_v47 = vld [vmem:[#allocation6 + $0x114] sm:$0xf0]  ;;  %v2999_v60 = vor.u32 %v3459_v44, %v2998_v43  ;;  %v3373_v21 = vld [vmem:[#allocation6 + $0x36c] sm:$0xf] }
  0x8a   :  { %1505 = vmatpush.bf16.msrb.mxu0 %v2535_v4  ;;  %v2359_v63 = vor.u32 %v3299_v47, %v2358_v37  ;;  %v3313_v37 = vld [vmem:[#allocation6 + $0x18c] sm:$0xf]  ;;  %v3439_v47 = vld [vmem:[#allocation6 + $0x574] sm:$0xf0] }
  0x8b   :  { %1479 = vmatpush.bf16.msrb.mxu1 %v2279_v1  ;;  %v2983_v1 = vor.u32 %v3455_v54, %v2982_v53  ;;  %v2427_v44 = vor.u32 %v3313_v37, %v2424_v38  ;;  %v2360_v37 = vld [vmem:[#allocation6 + $0x118] sm:$0xf0] }
  0x8c   :  { %1517 = vmatpush.bf16.msra.mxu2 %v2679_v59  ;;  %3005 = vmatmul.msk.bf16.vlgmr.msrb.gmra.mxu3 %vm1289_vm0, %v3744_v46  ;;  %v3419_v59 = vld [vmem:[#allocation6 + $0x4d4] sm:$0xf0] }
  0x8d   :  { %1491 = vmatpush.bf16.msra.mxu3 %v2423_v62  ;;  %v2472_v62 = vld [vmem:[#allocation6 + $0x1f8] sm:$0xf0]  ;;  %v2839_v4 = vor.u32 %v3419_v59, %v2838_v55  ;;  %v3273_v55 = vld [vmem:[#allocation6 + $0x4c] sm:$0xf]  ;;  %v2775_v59 = vor.u32 %v3403_v49, %v2774_v48 }
  0x8e   :  { %1506 = vmatpush.bf16.msrb.mxu0 %v2519_v17  ;;  %v2475_v5 = vor.u32 %v3325_v61, %v2472_v62  ;;  %v2823_v17 = vor.u32 %v3415_v10, %v2822_v9  ;;  %v2902_v61 = vld [vmem:[#allocation6 + $0x548] sm:$0xf]  ;;  %v3435_v62 = vld [vmem:[#allocation6 + $0x554] sm:$0xf0]  ;;  %v3417_v48 = vld [vmem:[#allocation6 + $0x4cc] sm:$0xf] }
  0x8f   :  { %1480 = vmatpush.bf16.msrb.mxu1 %v2263_v14  ;;  %v2886_v10 = vld [vmem:[#allocation6 + $0x528] sm:$0xf]  ;;  %v2840_v49 = vld [vmem:[#allocation6 + $0x4d8] sm:$0xf0] }
  0x90   :  { %1518 = vmatpush.bf16.msra.mxu2 %v2663_v7  ;;  %v3451_v7 = vld [vmem:[#allocation6 + $0x5d4] sm:$0xf0] }
  0x91   :  { %1492 = vmatpush.bf16.msra.mxu3 %v2407_v11  ;;  %v3321_v11 = vld [vmem:[#allocation6 + $0x1cc] sm:$0xf]  ;;  %v2967_v14 = vor.u32 %v3451_v7, %v2966_v6  ;;  %v2248_v6 = vld [vmem:[#allocation6 + $0x38] sm:$0xf0] }
  0x92   :  { %1507 = vmatpush.bf16.msrb.mxu0 %v2503_v30  ;;  %v2459_v18 = vor.u32 %v3321_v11, %v2456_v12  ;;  %v3431_v11 = vld [vmem:[#allocation6 + $0x534] sm:$0xf0]  ;;  %v2742_v12 = vld [vmem:[#allocation6 + $0x408] sm:$0xf] }
  0x93   :  { %1481 = vmatpush.bf16.msrb.mxu1 %v2247_v26 }
  0x94   :  { %1519 = vmatpush.bf16.msra.mxu2 %v2647_v20  ;;  %v3447_v20 = vld [vmem:[#allocation6 + $0x5b4] sm:$0xf0] }
  0x95   :  { %1493 = vmatpush.bf16.msra.mxu3 %v2391_v23  ;;  %v3317_v23 = vld [vmem:[#allocation6 + $0x1ac] sm:$0xf]  ;;  %v2951_v26 = vor.u32 %v3447_v20, %v2950_v19  ;;  %v2887_v19 = vor.u32 %v3431_v11, %v2886_v10  ;;  %v2870_v20 = vld [vmem:[#allocation6 + $0x508] sm:$0xf]  ;;  %v2680_v11 = vld [vmem:[#allocation6 + $0x398] sm:$0xf0] }
  0x96   :  { %1508 = vmatpush.bf16.msrb.mxu0 %v2487_v51  ;;  %v2443_v30 = vor.u32 %v3317_v23, %v2440_v24  ;;  %v2408_v51 = vld [vmem:[#allocation6 + $0x178] sm:$0xf0] }
  0x97   :  { %1482 = vmatpush.bf16.msrb.mxu1 %v2231_v45  ;;  %v2918_v45 = vld [vmem:[#allocation6 + $0x568] sm:$0xf] }
  0x98   :  { %1520 = vmatpush.bf16.msra.mxu2 %v2631_v35  ;;  %v3407_v35 = vld [vmem:[#allocation6 + $0x474] sm:$0xf0]  ;;  %v2919_v54 = vor.u32 %v3439_v47, %v2918_v45  ;;  %v2712_v47 = vld [vmem:[#allocation6 + $0x3d8] sm:$0xf0] }
  0x99   :  { %1494 = vmatpush.bf16.msra.mxu3 %v2375_v41  ;;  %1509 = vmatmul.bf16.vlgmr.msrb.gmra.mxu0 %v3732_v52  ;;  %v3277_v41 = vld [vmem:[#allocation6 + $0x6c] sm:$0xf]  ;;  %v2791_v43 = vor.u32 %v3407_v35, %v2790_v34  ;;  %v2584_v34 = vld [vmem:[#allocation6 + $0x2d8] sm:$0xf0] }
  0x9a   :  { %1560 = vmatpush.bf16.msra.mxu0 %v2999_v60  ;;  %1483 = vmatmul.bf16.vlgmr.msrb.gmra.mxu1 %v3734_v56  ;;  %v2283_v53 = vor.u32 %v3277_v41, %v2280_v42  ;;  %v3297_v35 = vld [vmem:[#allocation6 + $0x10c] sm:$0xf] }
  0x9b   :  { %1527 = vmatpush.bf16.msra.mxu1 %v2855_v50  ;;  %v3309_v50 = vld [vmem:[#allocation6 + $0x16c] sm:$0xf]  ;;  %v2363_v45 = vor.u32 %v3297_v35, %v2360_v37 }
  0x9c   :  { %1521 = vmatpush.bf16.msra.mxu2 %v2615_v57  ;;  %v2264_v57 = vld [vmem:[#allocation6 + $0x58] sm:$0xf0]  ;;  %v2411_v60 = vor.u32 %v3309_v50, %v2408_v51  ;;  %v3349_v51 = vld [vmem:[#allocation6 + $0x2ac] sm:$0xf] }
  0x9d   :  { %1495 = vmatpush.bf16.msra.mxu3 %v2359_v63  ;;  %v2758_v63 = vld [vmem:[#allocation6 + $0x428] sm:$0xf]  ;;  %v2267_v3 = vor.u32 %v3273_v55, %v2264_v57  ;;  %v2968_v55 = vld [vmem:[#allocation6 + $0x5d8] sm:$0xf0]  ;;  %v3369_v35 = vld [vmem:[#allocation6 + $0x34c] sm:$0xf] }
  0x9e   :  { %1579 = vmatpush.bf16.msrb.mxu0 %v2475_v5  ;;  %v3269_v5 = vld [vmem:[#allocation6 + $0x2c] sm:$0xf] }
  0x9f   :  { %1528 = vmatpush.bf16.msra.mxu1 %v2839_v4  ;;  %1522 = vmatmul.bf16.vlgmr.msra.gmra.mxu2 %v3736_v58  ;;  %v2903_v4 = vor.u32 %v3435_v62, %v2902_v61  ;;  %v2251_v16 = vor.u32 %v3269_v5, %v2248_v6  ;;  %v2696_v62 = vld [vmem:[#allocation6 + $0x3b8] sm:$0xf0] }
  0xa0   :  { %1566 = vmatpush.bf16.msrb.mxu2 %v2347_v0  ;;  %1496 = vmatmul.bf16.vlgmr.msra.gmra.mxu3 %v3740_v8  ;;  %v3399_v0 = vld [vmem:[#allocation6 + $0x434] sm:$0xf0]  ;;  %v2952_v5 = vld [vmem:[#allocation6 + $0x5b8] sm:$0xf0] }
  0xa1   :  { %1540 = vmatpush.bf16.msrb.mxu3 %v2983_v1  ;;  %v3305_v1 = vld [vmem:[#allocation6 + $0x14c] sm:$0xf]  ;;  %v2759_v7 = vor.u32 %v3399_v0, %v2758_v63  ;;  %v2824_v0 = vld [vmem:[#allocation6 + $0x4b8] sm:$0xf0] }
  0xa2   :  { %1580 = vmatpush.bf16.msrb.mxu0 %v2459_v18  ;;  %v2395_v9 = vor.u32 %v3305_v1, %v2392_v2  ;;  %v2600_v18 = vld [vmem:[#allocation6 + $0x2f8] sm:$0xf0]  ;;  %v3413_v63 = vld [vmem:[#allocation6 + $0x4ac] sm:$0xf] }
  0xa3   :  { %1529 = vmatpush.bf16.msra.mxu1 %v2823_v17  ;;  %v3357_v17 = vld [vmem:[#allocation6 + $0x2ec] sm:$0xf] }
  0xa4   :  { %1567 = vmatpush.bf16.msrb.mxu2 %v2331_v13  ;;  %v3395_v13 = vld [vmem:[#allocation6 + $0x414] sm:$0xf0]  ;;  %v2603_v28 = vor.u32 %v3357_v17, %v2600_v18  ;;  %v3345_v2 = vld [vmem:[#allocation6 + $0x28c] sm:$0xf]  ;;  %v2936_v18 = vld [vmem:[#allocation6 + $0x598] sm:$0xf0] }
  0xa5   :  { %1541 = vmatpush.bf16.msrb.mxu3 %v2967_v14  ;;  %v3301_v14 = vld [vmem:[#allocation6 + $0x12c] sm:$0xf]  ;;  %v2743_v23 = vor.u32 %v3395_v13, %v2742_v12  ;;  %v2808_v13 = vld [vmem:[#allocation6 + $0x498] sm:$0xf0] }
  0xa6   :  { %1581 = vmatpush.bf16.msrb.mxu0 %v2443_v30  ;;  %v2379_v24 = vor.u32 %v3301_v14, %v2376_v15  ;;  %v2856_v30 = vld [vmem:[#allocation6 + $0x4f8] sm:$0xf0]  ;;  %v3409_v12 = vld [vmem:[#allocation6 + $0x48c] sm:$0xf] }
  0xa7   :  { %1530 = vmatpush.bf16.msra.mxu1 %v2807_v29  ;;  %v3421_v29 = vld [vmem:[#allocation6 + $0x4ec] sm:$0xf] }
  0xa8   :  { %1568 = vmatpush.bf16.msrb.mxu2 %v2315_v25  ;;  %v3427_v25 = vld [vmem:[#allocation6 + $0x514] sm:$0xf0]  ;;  %v2859_v42 = vor.u32 %v3421_v29, %v2856_v30  ;;  %v3341_v15 = vld [vmem:[#allocation6 + $0x26c] sm:$0xf]  ;;  %v2920_v30 = vld [vmem:[#allocation6 + $0x578] sm:$0xf0] }
  0xa9   :  { %1542 = vmatpush.bf16.msrb.mxu3 %v2951_v26  ;;  %3006 = vmatmul.msk.bf16.vlgmr.msra.gmra.mxu0 %vm1289_vm0, %v3744_v46  ;;  %v3389_v26 = vld [vmem:[#allocation6 + $0x3ec] sm:$0xf]  ;;  %v2871_v38 = vor.u32 %v3427_v25, %v2870_v20  ;;  %v2811_v20 = vor.u32 %v3409_v12, %v2808_v13  ;;  %v2792_v25 = vld [vmem:[#allocation6 + $0x478] sm:$0xf0] }
  0xaa   :  { %1582 = vmatpush.bf16.msrb.mxu0 %v2427_v44  ;;  %v2731_v41 = vor.u32 %v3389_v26, %v2728_v27  ;;  %v2587_v44 = vor.u32 %v3353_v32, %v2584_v34  ;;  %v3337_v27 = vld [vmem:[#allocation6 + $0x24c] sm:$0xf]  ;;  %v2744_v13 = vld [vmem:[#allocation6 + $0x418] sm:$0xf0] }
  0xab   :  { %1531 = vmatpush.bf16.msra.mxu1 %v2791_v43  ;;  %v3385_v43 = vld [vmem:[#allocation6 + $0x3cc] sm:$0xf] }
  0xac   :  { %1569 = vmatpush.bf16.msrb.mxu2 %v2299_v39  ;;  %v3453_v39 = vld [vmem:[#allocation6 + $0x5ec] sm:$0xf]  ;;  %v2715_v57 = vor.u32 %v3385_v43, %v2712_v47 }
  0xad   :  { %1543 = vmatpush.bf16.msrb.mxu3 %v2935_v40  ;;  %v2984_v40 = vld [vmem:[#allocation6 + $0x5f8] sm:$0xf0]  ;;  %v3437_v29 = vld [vmem:[#allocation6 + $0x56c] sm:$0xf] }
  0xae   :  { %1583 = vmatpush.bf16.msrb.mxu0 %v2411_v60  ;;  %v2987_v50 = vor.u32 %v3453_v39, %v2984_v40  ;;  %v3381_v60 = vld [vmem:[#allocation6 + $0x3ac] sm:$0xf]  ;;  %v2648_v39 = vld [vmem:[#allocation6 + $0x358] sm:$0xf0] }
  0xaf   :  { %1532 = vmatpush.bf16.msra.mxu1 %v2775_v59  ;;  %v2843_v59 = vor.u32 %v3417_v48, %v2840_v49  ;;  %v2699_v6 = vor.u32 %v3381_v60, %v2696_v62  ;;  %v3401_v40 = vld [vmem:[#allocation6 + $0x44c] sm:$0xf]  ;;  %v2904_v48 = vld [vmem:[#allocation6 + $0x558] sm:$0xf0]  ;;  %v3780_v49 = vld [vmem:[#allocation8] sm:$0xf] }
  0xb0   :  { %1570 = vmatpush.bf16.msrb.mxu2 %v2283_v53  ;;  %v2568_v53 = vld [vmem:[#allocation6 + $0x2b8] sm:$0xf0]  ;;  %v3333_v43 = vld [vmem:[#allocation6 + $0x22c] sm:$0xf] }
  0xb1   :  { %1544 = vmatpush.bf16.msrb.mxu3 %v2919_v54  ;;  %v3449_v54 = vld [vmem:[#allocation6 + $0x5cc] sm:$0xf]  ;;  %v2571_v61 = vor.u32 %v3349_v51, %v2568_v53  ;;  %v2488_v62 = vld [vmem:[#allocation6 + $0x218] sm:$0xf0] }
  0xb2   :  { %1584 = vmatpush.bf16.msrb.mxu0 %v2395_v9  ;;  %v2971_v1 = vor.u32 %v3449_v54, %v2968_v55  ;;  %v3377_v9 = vld [vmem:[#allocation6 + $0x38c] sm:$0xf]  ;;  %v2632_v55 = vld [vmem:[#allocation6 + $0x338] sm:$0xf0] }
  0xb3   :  { %1533 = vmatpush.bf16.msra.mxu1 %v2759_v7  ;;  %v2827_v7 = vor.u32 %v3413_v63, %v2824_v0  ;;  %v3433_v47 = vld [vmem:[#allocation6 + $0x54c] sm:$0xf] }
  0xb4   :  { %1571 = vmatpush.bf16.msrb.mxu2 %v2267_v3  ;;  %v2552_v3 = vld [vmem:[#allocation6 + $0x298] sm:$0xf0]  ;;  %v3365_v53 = vld [vmem:[#allocation6 + $0x32c] sm:$0xf]  ;;  %v2907_v60 = vor.u32 %v3433_v47, %v2904_v48 }
  0xb5   :  { %1545 = vmatpush.bf16.msrb.mxu3 %v2903_v4  ;;  %v3445_v4 = vld [vmem:[#allocation6 + $0x5ac] sm:$0xf]  ;;  %v2555_v10 = vor.u32 %v3345_v2, %v2552_v3  ;;  %v3000_v3 = vld [vmem:[#allocation6 + $0x618] sm:$0xf0] }
  0xb6   :  { %1585 = vmatpush.bf16.msrb.mxu0 %v2379_v24  ;;  %v2955_v14 = vor.u32 %v3445_v4, %v2952_v5  ;;  %v3772_v17 = vpop.f32.mrf.mxu0  ;;  %v3405_v24 = vld [vmem:[#allocation6 + $0x46c] sm:$0xf]  ;;  %v301_v4 = vperm.slane %v3780_v49, 0 }
  0xb7   :  { %1534 = vmatpush.bf16.msra.mxu1 %v2743_v23  ;;  %v2664_v23 = vld [vmem:[#allocation6 + $0x378] sm:$0xf0]  ;;  %v2795_v34 = vor.u32 %v3405_v24, %v2792_v25  ;;  %v3429_v63 = vld [vmem:[#allocation6 + $0x52c] sm:$0xf] }
  0xb8   :  { %1572 = vmatpush.bf16.msrb.mxu2 %v2251_v16  ;;  %v2536_v16 = vld [vmem:[#allocation6 + $0x278] sm:$0xf0]  ;;  %v3457_v2 = vld [vmem:[#allocation6 + $0x60c] sm:$0xf] }
  0xb9   :  { %1546 = vmatpush.bf16.msrb.mxu3 %v2887_v19  ;;  %v2683_v19 = vor.u32 %v3377_v9, %v2680_v11  ;;  %v2539_v22 = vor.u32 %v3341_v15, %v2536_v16  ;;  %v3361_v9 = vld [vmem:[#allocation6 + $0x30c] sm:$0xf]  ;;  %v2616_v11 = vld [vmem:[#allocation6 + $0x318] sm:$0xf0]  ;;  %v3003_v16 = vor.u32 %v3457_v2, %v3000_v3  ;;  %v3090_v3 = vld [vmem:[#allocation9 + $0xa0] sm:$0xf] }
  0xba   :  { %1535 = vmatmul.bf16.vlgmr.msra.gmra.mxu1 %v3748_v31  ;;  %1586 = vmatpush.bf16.msrb.mxu0 %v2363_v45  ;;  %v3393_v12 = vld [vmem:[#allocation6 + $0x40c] sm:$0xf]  ;;  %v2619_v24 = vor.u32 %v3361_v9, %v2616_v11  ;;  %v3463_v11 = vld [vmem:[#allocation9 + $0x14] sm:$0xf0] }
  0xbb   :  { %1592 = vmatpush.bf16.msrb.mxu1 %v2603_v28  ;;  %v2520_v28 = vld [vmem:[#allocation6 + $0x258] sm:$0xf0]  ;;  %v2747_v25 = vor.u32 %v3393_v12, %v2744_v13  ;;  %v3082_v13 = vld [vmem:[#allocation9 + $0x90] sm:$0xf] }
  0xbc   :  { %1573 = vmatpush.bf16.msrb.mxu2 %v2235_v33  ;;  %v2667_v33 = vor.u32 %v3373_v21, %v2664_v23  ;;  %v2523_v37 = vor.u32 %v3337_v27, %v2520_v28  ;;  %v3130_v21 = vld [vmem:[#allocation9 + $0xf0] sm:$0xf]  ;;  %v1303_v23 = vadd.f32 %v3772_v17, %v301_v4  ;;  %v3058_v28 = vld [vmem:[#allocation9 + $0x60] sm:$0xf]  ;;  %v3481_v4 = vld [vmem:[#allocation9 + $0xa4] sm:$0xf0] }
  0xbd   :  { %1547 = vmatpush.bf16.msrb.mxu3 %v2871_v38  ;;  %1587 = vmatmul.bf16.vlgmr.msrb.gmra.mxu0 %v3740_v8  ;;  %v3774_v26 = vpop.f32.mrf.mxu1  ;;  %v3091_v12 = vor.u32 %v3481_v4, %v3090_v3  ;;  %v3464_v4 = vld [vmem:[#allocation9 + $0x24] sm:$0xf] }
  0xbe   :  { %1631 = vmatpush.bf16.msra.mxu0 %v2987_v50  ;;  %v3776_v32 = vpop.f32.mrf.mxu2  ;;  %v1304_v45 = vpop.f32.mrf.mxu0  ;;  %v2651_v50 = vor.u32 %v3369_v35, %v2648_v39  ;;  %v1316_v35 = vadd.f32 %v3774_v26, %v1303_v23  ;;  %v3050_v39 = vld [vmem:[#allocation9 + $0x50] sm:$0xf]  ;;  %v3042_v26 = vld [vmem:[#allocation9 + $0x40] sm:$0xf]  ;;  %v3477_v23 = vld [vmem:[#allocation9 + $0x84] sm:$0xf0] }
  0xbf   :  { %1593 = vmatpush.bf16.msrb.mxu1 %v2587_v44  ;;  %1574 = vmatmul.bf16.vlgmr.msrb.gmra.mxu2 %v3734_v56  ;;  %v3441_v56 = vld [vmem:[#allocation6 + $0x58c] sm:$0xf]  ;;  %v2504_v44 = vld [vmem:[#allocation6 + $0x238] sm:$0xf0] }
  0xc0   :  { %1618 = vmatpush.bf16.msra.mxu2 %v2859_v42  ;;  %1548 = vmatmul.bf16.vlgmr.msrb.gmra.mxu3 %v3750_v36  ;;  %v2939_v8 = vor.u32 %v3441_v56, %v2936_v18  ;;  %v2923_v42 = vor.u32 %v3437_v29, %v2920_v30  ;;  %v2507_v54 = vor.u32 %v3333_v43, %v2504_v44  ;;  %v3066_v56 = vld [vmem:[#allocation9 + $0x70] sm:$0xf]  ;;  %v3475_v18 = vld [vmem:[#allocation9 + $0x74] sm:$0xf0]  ;;  %v3473_v29 = vld [vmem:[#allocation9 + $0x64] sm:$0xf0] }
  0xc1   :  { %1605 = vmatpush.bf16.msra.mxu3 %v2731_v41  ;;  %v3778_v38 = vpop.f32.mrf.mxu3  ;;  %v2776_v41 = vld [vmem:[#allocation6 + $0x458] sm:$0xf0]  ;;  %v1329_v44 = vadd.f32 %v3776_v32, %v1316_v35  ;;  %v3469_v45 = vld [vmem:[#allocation9 + $0x44] sm:$0xf0] }
  0xc2   :  { %1632 = vmatpush.bf16.msra.mxu0 %v2971_v1  ;;  %v2779_v51 = vor.u32 %v3401_v40, %v2776_v41  ;;  %v2888_v1 = vld [vmem:[#allocation6 + $0x538] sm:$0xf0] }
  0xc3   :  { %1594 = vmatpush.bf16.msrb.mxu1 %v2571_v61  ;;  %v3329_v61 = vld [vmem:[#allocation6 + $0x20c] sm:$0xf]  ;;  %v2891_v15 = vor.u32 %v3429_v63, %v2888_v1  ;;  %v3471_v40 = vld [vmem:[#allocation9 + $0x54] sm:$0xf0]  ;;  %v3026_v63 = vld [vmem:[#allocation9 + $0x20] sm:$0xf] }
  0xc4   :  { %1619 = vmatpush.bf16.msra.mxu2 %v2843_v59  ;;  %v2760_v59 = vld [vmem:[#allocation6 + $0x438] sm:$0xf0] }
  0xc5   :  { %1606 = vmatpush.bf16.msra.mxu3 %v2715_v57  ;;  %v3397_v57 = vld [vmem:[#allocation6 + $0x42c] sm:$0xf]  ;;  %v1317_v0 = vpop.f32.mrf.mxu1  ;;  %v3487_v43 = vld [vmem:[#allocation9 + $0xd4] sm:$0xf0] }
  0xc6   :  { %1633 = vmatpush.bf16.msra.mxu0 %v2955_v14  ;;  %v1330_v5 = vpop.f32.mrf.mxu2  ;;  %v3465_v0 = vld [vmem:[#allocation9 + $0x24] sm:$0xf0] }
  0xc7   :  { %1595 = vmatpush.bf16.msrb.mxu1 %v2555_v10  ;;  %v2491_v10 = vor.u32 %v3329_v61, %v2488_v62 }
  0xc8   :  { %1620 = vmatpush.bf16.msra.mxu2 %v2827_v7  ;;  %v2763_v7 = vor.u32 %v3397_v57, %v2760_v59  ;;  %v3034_v57 = vld [vmem:[#allocation9 + $0x30] sm:$0xf] }
  0xc9   :  { %1607 = vmatpush.bf16.msra.mxu3 %v2699_v6  ;;  %v2635_v6 = vor.u32 %v3365_v53, %v2632_v55  ;;  %v1343_v14 = vpop.f32.mrf.mxu3  ;;  %v1342_v53 = vadd.f32 %v3778_v38, %v1329_v44  ;;  %v3043_v55 = vor.u32 %v3469_v45, %v3042_v26  ;;  %v3486_v44 = vld [vmem:[#allocation9 + $0xd4] sm:$0xf]  ;;  %v3468_v45 = vld [vmem:[#allocation9 + $0x44] sm:$0xf] }
  0xca   :  { %1634 = vmatpush.bf16.msra.mxu0 %v2939_v8  ;;  %v3067_v8 = vor.u32 %v3475_v18, %v3066_v56  ;;  %v3479_v14 = vld [vmem:[#allocation9 + $0x94] sm:$0xf0]  ;;  %v3461_v18 = vld [vmem:[#allocation9 + $0x4] sm:$0xf0] }
  0xcb   :  { %1596 = vmatpush.bf16.msrb.mxu1 %v2539_v22  ;;  %v3491_v22 = vld [vmem:[#allocation9 + $0xf4] sm:$0xf0] }
  0xcc   :  { %1621 = vmatpush.bf16.msra.mxu2 %v2811_v20  ;;  %v2872_v20 = vld [vmem:[#allocation6 + $0x518] sm:$0xf0]  ;;  %v3131_v30 = vor.u32 %v3491_v22, %v3130_v21  ;;  %v3068_v21 = vld [vmem:[#allocation9 + $0x78] sm:$0xf0]  ;;  %v3074_v22 = vld [vmem:[#allocation9 + $0x80] sm:$0xf] }
  0xcd   :  { %1608 = vmatpush.bf16.msra.mxu3 %v2683_v19  ;;  %v3425_v19 = vld [vmem:[#allocation6 + $0x50c] sm:$0xf] }
  0xce   :  { %1635 = vmatpush.bf16.msra.mxu0 %v2923_v42  ;;  %v2875_v27 = vor.u32 %v3425_v19, %v2872_v20  ;;  %v1380_v17 = vpop.f32.mrf.mxu2  ;;  %v3114_v42 = vld [vmem:[#allocation9 + $0xd0] sm:$0xf]  ;;  %v3474_v19 = vld [vmem:[#allocation9 + $0x74] sm:$0xf] }
  0xcf   :  { %1597 = vmatpush.bf16.msrb.mxu1 %v2523_v37  ;;  %v3059_v37 = vor.u32 %v3473_v29, %v3058_v28  ;;  %v3115_v47 = vor.u32 %v3487_v43, %v3114_v42  ;;  %v3071_v29 = vor.u32 %v3474_v19, %v3068_v21  ;;  %v3052_v42 = vld [vmem:[#allocation9 + $0x58] sm:$0xf0]  ;;  %v3462_v19 = vld [vmem:[#allocation9 + $0x14] sm:$0xf] }
  0xd0   :  { %1622 = vmatpush.bf16.msra.mxu2 %v2795_v34  ;;  %v3489_v34 = vld [vmem:[#allocation9 + $0xe4] sm:$0xf0]  ;;  %v3478_v21 = vld [vmem:[#allocation9 + $0x94] sm:$0xf] }
  0xd1   :  { %1609 = vmatpush.bf16.msra.mxu3 %v2667_v33  ;;  %v3122_v33 = vld [vmem:[#allocation9 + $0xe0] sm:$0xf] }
  0xd2   :  { %1636 = vmatpush.bf16.msra.mxu0 %v2907_v60  ;;  %v3123_v41 = vor.u32 %v3489_v34, %v3122_v33  ;;  %v3483_v60 = vld [vmem:[#allocation9 + $0xb4] sm:$0xf0]  ;;  %v3472_v33 = vld [vmem:[#allocation9 + $0x64] sm:$0xf]  ;;  %v3060_v34 = vld [vmem:[#allocation9 + $0x68] sm:$0xf0] }
  0xd3   :  { %1598 = vmatpush.bf16.msrb.mxu1 %v2507_v54 }
  0xd4   :  { %1623 = vmatpush.bf16.msra.mxu2 %v2779_v51  ;;  %v3485_v51 = vld [vmem:[#allocation9 + $0xc4] sm:$0xf0] }
  0xd5   :  { %1610 = vmatpush.bf16.msra.mxu3 %v2651_v50  ;;  %v3106_v50 = vld [vmem:[#allocation9 + $0xc0] sm:$0xf] }
  0xd6   :  { %1637 = vmatpush.bf16.msra.mxu0 %v2891_v15  ;;  %v1354_v48 = vpop.f32.mrf.mxu0  ;;  %v1382_v54 = vpop.f32.mrf.mxu2  ;;  %v3107_v59 = vor.u32 %v3485_v51, %v3106_v50  ;;  %v3484_v50 = vld [vmem:[#allocation9 + $0xc4] sm:$0xf]  ;;  %v3108_v51 = vld [vmem:[#allocation9 + $0xc8] sm:$0xf0] }
  0xd7   :  { %1599 = vmatpush.bf16.msrb.mxu1 %v2491_v10  ;;  %v1355_v32 = vadd.f32 %v1354_v48, %v1342_v53  ;;  %v3018_v10 = vld [vmem:[#allocation9 + $0x10] sm:$0xf]  ;;  %v3507_v54 = vld [vmem:[#allocation9 + $0x174] sm:$0xf0] }
  0xd8   :  { %1624 = vmatpush.bf16.msra.mxu2 %v2763_v7  ;;  %v3019_v15 = vor.u32 %v3463_v11, %v3018_v10  ;;  %v3480_v10 = vld [vmem:[#allocation9 + $0xa4] sm:$0xf]  ;;  %v3092_v11 = vld [vmem:[#allocation9 + $0xa8] sm:$0xf0] }
  0xd9   :  { %1611 = vmatpush.bf16.msra.mxu3 %v2635_v6  ;;  %v3027_v6 = vor.u32 %v3465_v0, %v3026_v63  ;;  %v3482_v63 = vld [vmem:[#allocation9 + $0xb4] sm:$0xf]  ;;  %v3100_v0 = vld [vmem:[#allocation9 + $0xb8] sm:$0xf0] }
  0xda   :  { %1600 = vmatmul.bf16.vlgmr.msrb.gmra.mxu1 %v3732_v52  ;;  %1638 = vmatpush.bf16.msra.mxu0 %v2875_v27  ;;  %v3051_v52 = vor.u32 %v3471_v40, %v3050_v39  ;;  %v3063_v40 = vor.u32 %v3472_v33, %v3060_v34  ;;  %v3076_v34 = vld [vmem:[#allocation9 + $0x88] sm:$0xf0] }
  0xdb   :  { %1651 = vmatpush.bf16.msra.mxu1 %v3003_v16  ;;  %v3010_v16 = vld [vmem:[#allocation9] sm:$0xf] }
  0xdc   :  { %1625 = vmatpush.bf16.msra.mxu2 %v2747_v25  ;;  %v3132_v25 = vld [vmem:[#allocation9 + $0xf8] sm:$0xf0] }
  0xdd   :  { %1612 = vmatpush.bf16.msra.mxu3 %v2619_v24  ;;  %1639 = vmatmul.bf16.vlgmr.msra.gmra.mxu0 %v3750_v36  ;;  %v3098_v36 = vld [vmem:[#allocation9 + $0xb0] sm:$0xf]  ;;  %v3490_v24 = vld [vmem:[#allocation9 + $0xf4] sm:$0xf] }
  0xde   :  { %v3099_v1 = vor.u32 %v3483_v60, %v3098_v36  ;;  %v1356_v38 = vpop.f32.mrf.mxu0  ;;  %v3135_v35 = vor.u32 %v3490_v24, %v3132_v25  ;;  %v3036_v36 = vld [vmem:[#allocation9 + $0x38] sm:$0xf0]  ;;  %v3111_v60 = vor.u32 %v3484_v50, %v3108_v51  ;;  %v3170_v24 = vld [vmem:[#allocation9 + $0x140] sm:$0xf]  ;;  %v3501_v25 = vld [vmem:[#allocation9 + $0x144] sm:$0xf0] }
  0xdf   :  { %2072 = vmatpush.bf16.msrb.mxu1 %v3131_v30  ;;  %1626 = vmatmul.bf16.vlgmr.msra.gmra.mxu2 %v3748_v31  ;;  %v3467_v31 = vld [vmem:[#allocation9 + $0x34] sm:$0xf0]  ;;  %v3791_v2 = vpop.f32.mrf.mxu3  ;;  %v3075_v30 = vor.u32 %v3477_v23, %v3074_v22  ;;  %v3084_v22 = vld [vmem:[#allocation9 + $0x98] sm:$0xf0]  ;;  %v3146_v51 = vld [vmem:[#allocation9 + $0x110] sm:$0xf] }
  0xe0   :  { %1613 = vmatmul.bf16.vlgmr.msra.gmra.mxu3 %v3736_v58  ;;  %v1367_v58 = vpop.f32.mrf.mxu1  ;;  %v3035_v61 = vor.u32 %v3467_v31, %v3034_v57  ;;  %v3466_v57 = vld [vmem:[#allocation9 + $0x34] sm:$0xf] }
  0xe1   :  { %2059 = vmatpush.bf16.msrb.mxu3 %v3067_v8  ;;  %v1368_v62 = vadd.f32 %v1367_v58, %v1355_v32  ;;  %v3011_v8 = vor.u32 %v3461_v18, %v3010_v16  ;;  %v3194_v58 = vld [vmem:[#allocation9 + $0x170] sm:$0xf]  ;;  %v3039_v38 = vor.u32 %v3466_v57, %v3036_v36  ;;  %v3493_v57 = vld [vmem:[#allocation9 + $0x104] sm:$0xf0]  ;;  %v3196_v36 = vld [vmem:[#allocation9 + $0x178] sm:$0xf0] }
  0xe2   :  { %v3795_v7 = vpop.f32.mrf.mxu2  ;;  %v3195_v31 = vor.u32 %v3507_v54, %v3194_v58 }
  0xe3   :  { %2073 = vmatpush.bf16.msrb.mxu1 %v3123_v41  ;;  %v1381_v9 = vadd.f32 %v1380_v17, %v1368_v62  ;;  %v3488_v17 = vld [vmem:[#allocation9 + $0xe4] sm:$0xf]  ;;  %v3470_v41 = vld [vmem:[#allocation9 + $0x54] sm:$0xf]  ;;  %v3505_v62 = vld [vmem:[#allocation9 + $0x164] sm:$0xf0] }
  0xe4   :  { %v3055_v26 = vor.u32 %v3470_v41, %v3052_v42  ;;  %2085 = vmatpush.bf16.msrb.mxu2 %v3195_v31  ;;  %v3506_v31 = vld [vmem:[#allocation9 + $0x174] sm:$0xf] }
  0xe5   :  { %2060 = vmatpush.bf16.msrb.mxu3 %v3059_v37  ;;  %v1657_v56 = vmul.f32 0.2, %v1381_v9  ;;  %v3124_v37 = vld [vmem:[#allocation9 + $0xe8] sm:$0xf0] }
  0xe6   :  { %v3127_v43 = vor.u32 %v3488_v17, %v3124_v37  ;;  %v3162_v17 = vld [vmem:[#allocation9 + $0x130] sm:$0xf]  ;;  %v3499_v37 = vld [vmem:[#allocation9 + $0x134] sm:$0xf0] }
  0xe7   :  { %2074 = vmatpush.bf16.msrb.mxu1 %v3115_v47  ;;  %v1395_v20 = vpop.f32.mrf.mxu3  ;;  %v1661_v28 = vmax.f32 %v1381_v9, %v1657_v56  ;;  %v3044_v47 = vld [vmem:[#allocation9 + $0x48] sm:$0xf0] }
  0xe8   :  { %v1369_v5 = vpop.f32.mrf.mxu1  ;;  %v3047_v32 = vor.u32 %v3468_v45, %v3044_v47  ;;  %v3095_v20 = vor.u32 %v3480_v10, %v3092_v11 }
  0xe9   :  { %2061 = vmatpush.bf16.msrb.mxu3 %v3051_v52  ;;  %v3797_v39 = vpack.c.bf16 %v1661_v28, %v1661_v28  ;;  %v3116_v52 = vld [vmem:[#allocation9 + $0xd8] sm:$0xf0]  ;;  %v3028_v5 = vld [vmem:[#allocation9 + $0x28] sm:$0xf0]  ;;  %v3460_v28 = vld [vmem:[#allocation9 + $0x4] sm:$0xf] }
  0xea   :  { %3007 = vmatmul.msk.bf16.vlgmr.msra.gmra.mxu1 %vm1289_vm0, %v3744_v46  ;;  %v3083_v46 = vor.u32 %v3479_v14, %v3082_v13  ;;  %v1408_v27 = vpop.f32.mrf.mxu2  ;;  %v3119_v48 = vor.u32 %v3486_v44, %v3116_v52  ;;  %v3178_v13 = vld [vmem:[#allocation9 + $0x150] sm:$0xf]  ;;  %v3503_v14 = vld [vmem:[#allocation9 + $0x154] sm:$0xf0]  ;;  %v3031_v16 = vor.u32 %v3464_v4, %v3028_v5  ;;  %v3497_v44 = vld [vmem:[#allocation9 + $0x124] sm:$0xf0] }
  0xeb   :  { %2075 = vmatpush.bf16.msrb.mxu1 %v3107_v59  ;;  %v3179_v56 = vor.u32 %v3503_v14, %v3178_v13  ;;  %v3171_v27 = vor.u32 %v3501_v25, %v3170_v24  ;;  %v3523_v4 = vld [vmem:[#allocation9 + $0x1f4] sm:$0xf0]  ;;  %v3250_v13 = vld [vmem:[#allocation9 + $0x1e0] sm:$0xf]  ;;  %v3521_v14 = vld [vmem:[#allocation9 + $0x1e4] sm:$0xf0] }
  0xed   :  { %2062 = vmatpush.bf16.msrb.mxu3 %v3043_v55  ;;  %v302_v55 = vperm.slane %v3780_v49, 1 }
  0xef   :  { %2076 = vmatpush.bf16.msrb.mxu1 %v3099_v1  ;;  %v1394_v3 = vadd.f32 %v3791_v2, %v302_v55 }
  0xf1   :  { %2063 = vmatpush.bf16.msrb.mxu3 %v3035_v61  ;;  %v3186_v61 = vld [vmem:[#allocation9 + $0x160] sm:$0xf]  ;;  %v1407_v18 = vadd.f32 %v3795_v7, %v1394_v3  ;;  %v3476_v7 = vld [vmem:[#allocation9 + $0x84] sm:$0xf]  ;;  %v3258_v3 = vld [vmem:[#allocation9 + $0x1f0] sm:$0xf] }
  0xf2   :  { %v3187_v1 = vor.u32 %v3505_v62, %v3186_v61  ;;  %v3199_v61 = vor.u32 %v3506_v31, %v3196_v36  ;;  %v3259_v5 = vor.u32 %v3523_v4, %v3258_v3  ;;  %v3202_v31 = vld [vmem:[#allocation9 + $0x180] sm:$0xf]  ;;  %v3520_v4 = vld [vmem:[#allocation9 + $0x1e4] sm:$0xf] }
  0xf3   :  { %2077 = vmatpush.bf16.msrb.mxu1 %v3091_v12 }
  0xf4   :  { %2086 = vmatpush.bf16.msrb.mxu2 %v3187_v1  ;;  %v3188_v1 = vld [vmem:[#allocation9 + $0x168] sm:$0xf0]  ;;  %2098 = vmatpush.bf16.msrb.mxu0 %v3259_v5 }
  0xf5   :  { %2064 = vmatpush.bf16.msrb.mxu3 %v3027_v6  ;;  %v3103_v6 = vor.u32 %v3482_v63, %v3100_v0  ;;  %v3252_v5 = vld [vmem:[#allocation9 + $0x1e8] sm:$0xf0] }
  0xf6   :  { %v1419_v53 = vpop.f32.mrf.mxu0 }
  0xf7   :  { %2078 = vmatpush.bf16.msrb.mxu1 %v3083_v46  ;;  %v1432_v59 = vpop.f32.mrf.mxu1  ;;  %v3020_v46 = vld [vmem:[#allocation9 + $0x18] sm:$0xf0]  ;;  %v1420_v23 = vadd.f32 %v1419_v53, %v1407_v18  ;;  %v3495_v53 = vld [vmem:[#allocation9 + $0x114] sm:$0xf0]  ;;  %v3500_v18 = vld [vmem:[#allocation9 + $0x144] sm:$0xf] }
  0xf8   :  { %2087 = vmatpush.bf16.msrb.mxu2 %v3179_v56  ;;  %v3147_v54 = vor.u32 %v3495_v53, %v3146_v51  ;;  %v3140_v51 = vld [vmem:[#allocation9 + $0x108] sm:$0xf0]  ;;  %v3210_v53 = vld [vmem:[#allocation9 + $0x190] sm:$0xf] }
  0xf9   :  { %2065 = vmatpush.bf16.msrb.mxu3 %v3019_v15 }
  0xfb   :  { %2079 = vmatpush.bf16.msrb.mxu1 %v3075_v30  ;;  %v3087_v30 = vor.u32 %v3478_v21, %v3084_v22  ;;  %v3498_v22 = vld [vmem:[#allocation9 + $0x134] sm:$0xf] }
  0xfc   :  { %2088 = vmatpush.bf16.msrb.mxu2 %v3171_v27  ;;  %v3234_v27 = vld [vmem:[#allocation9 + $0x1c0] sm:$0xf] }
  0xfd   :  { %2066 = vmatpush.bf16.msrb.mxu3 %v3011_v8  ;;  %v3023_v8 = vor.u32 %v3462_v19, %v3020_v46  ;;  %v3172_v19 = vld [vmem:[#allocation9 + $0x148] sm:$0xf0] }
  0xfe   :  { %v1421_v12 = vpop.f32.mrf.mxu0  ;;  %v3175_v46 = vor.u32 %v3500_v18, %v3172_v19  ;;  %v3516_v18 = vld [vmem:[#allocation9 + $0x1c4] sm:$0xf]  ;;  %v3236_v19 = vld [vmem:[#allocation9 + $0x1c8] sm:$0xf0] }
  0xff   :  { %2124 = vmatpush.bf16.msra.mxu1 %v3135_v35  ;;  %v1445_v9 = vpop.f32.mrf.mxu3  ;;  %v1434_v2 = vpop.f32.mrf.mxu1  ;;  %v1433_v35 = vadd.f32 %v1432_v59, %v1420_v23  ;;  %v3164_v23 = vld [vmem:[#allocation9 + $0x138] sm:$0xf0] }
 0x100   :  { %2067 = vmatmul.bf16.vlgmr.msrb.gmra.mxu3 %v3797_v39  ;;  %v3242_v2 = vld [vmem:[#allocation9 + $0x1d0] sm:$0xf] }
 0x101   :  { %2111 = vmatpush.bf16.msra.mxu3 %v3071_v29  ;;  %v3012_v29 = vld [vmem:[#allocation9 + $0x8] sm:$0xf0]  ;;  %v1446_v52 = vadd.f32 %v1445_v9, %v1433_v35  ;;  %v3180_v9 = vld [vmem:[#allocation9 + $0x158] sm:$0xf0]  ;;  %v303_v35 = vperm.slane %v3780_v49, 2 }
 0x102   :  { %v1458_v15 = vpop.f32.mrf.mxu2  ;;  %v3015_v41 = vor.u32 %v3460_v28, %v3012_v29  ;;  %v3517_v28 = vld [vmem:[#allocation9 + $0x1c4] sm:$0xf0]  ;;  %v3496_v29 = vld [vmem:[#allocation9 + $0x124] sm:$0xf] }
 0x103   :  { %2125 = vmatpush.bf16.msra.mxu1 %v3127_v43  ;;  %v3163_v43 = vor.u32 %v3499_v37, %v3162_v17  ;;  %v1459_v47 = vadd.f32 %v1458_v15, %v1446_v52  ;;  %v3251_v15 = vor.u32 %v3521_v14, %v3250_v13 }
 0x105   :  { %2112 = vmatpush.bf16.msra.mxu3 %v3063_v40  ;;  %v3154_v40 = vld [vmem:[#allocation9 + $0x120] sm:$0xf]  ;;  %2089 = vmatpush.bf16.msrb.mxu2 %v3163_v43  ;;  %v3148_v43 = vld [vmem:[#allocation9 + $0x118] sm:$0xf0] }
 0x106   :  { %v3155_v45 = vor.u32 %v3497_v44, %v3154_v40  ;;  %2099 = vmatpush.bf16.msrb.mxu0 %v3251_v15 }
 0x107   :  { %2126 = vmatpush.bf16.msra.mxu1 %v3119_v48  ;;  %v1447_v33 = vpop.f32.mrf.mxu3 }
 0x108   :  { %v3156_v33 = vld [vmem:[#allocation9 + $0x128] sm:$0xf0] }
 0x109   :  { %2113 = vmatpush.bf16.msra.mxu3 %v3055_v26  ;;  %v3079_v26 = vor.u32 %v3476_v7, %v3076_v34  ;;  %2090 = vmatpush.bf16.msrb.mxu2 %v3155_v45  ;;  %v3226_v7 = vld [vmem:[#allocation9 + $0x1b0] sm:$0xf]  ;;  %v3515_v34 = vld [vmem:[#allocation9 + $0x1b4] sm:$0xf0]  ;;  %v3159_v37 = vor.u32 %v3496_v29, %v3156_v33  ;;  %v3513_v45 = vld [vmem:[#allocation9 + $0x1a4] sm:$0xf0] }
 0x10a   :  { %v1460_v42 = vpop.f32.mrf.mxu2  ;;  %v3227_v40 = vor.u32 %v3515_v34, %v3226_v7  ;;  %v3212_v29 = vld [vmem:[#allocation9 + $0x198] sm:$0xf0] }
 0x10b   :  { %2127 = vmatpush.bf16.msra.mxu1 %v3111_v60  ;;  %v3494_v42 = vld [vmem:[#allocation9 + $0x114] sm:$0xf] }
 0x10c   :  { %v3151_v52 = vor.u32 %v3494_v42, %v3148_v43 }
 0x10d   :  { %2114 = vmatpush.bf16.msra.mxu3 %v3047_v32  ;;  %2091 = vmatpush.bf16.msrb.mxu2 %v3147_v54  ;;  %v3138_v32 = vld [vmem:[#allocation9 + $0x100] sm:$0xf]  ;;  %v3511_v54 = vld [vmem:[#allocation9 + $0x194] sm:$0xf0] }
 0x10e   :  { %v3139_v59 = vor.u32 %v3493_v57, %v3138_v32  ;;  %v3211_v32 = vor.u32 %v3511_v54, %v3210_v53 }
 0x10f   :  { %2128 = vmatpush.bf16.msra.mxu1 %v3103_v6  ;;  %v1471_v48 = vpop.f32.mrf.mxu3  ;;  %v3502_v6 = vld [vmem:[#allocation9 + $0x154] sm:$0xf] }
 0x110   :  { %v1472_v50 = vadd.f32 %v1471_v48, %v1459_v47  ;;  %v3183_v12 = vor.u32 %v3502_v6, %v3180_v9 }
 0x111   :  { %2115 = vmatpush.bf16.msra.mxu3 %v3039_v38  ;;  %2092 = vmatpush.bf16.msrb.mxu2 %v3139_v59  ;;  %v3509_v59 = vld [vmem:[#allocation9 + $0x184] sm:$0xf0] }
 0x112   :  { %v1658_v58 = vmul.f32 0.2, %v1472_v50  ;;  %v3203_v36 = vor.u32 %v3509_v59, %v3202_v31  ;;  %v1733_v31 = vld [vmem:[%s3822_s4] sm:$0x3] }
 0x113   :  { %2129 = vmatpush.bf16.msra.mxu1 %v3095_v20  ;;  %v3519_v20 = vld [vmem:[#allocation9 + $0x1d4] sm:$0xf0]  ;;  %v1735_v59 = vperm.slane %v1733_v31, 0 }
 0x114   :  { %v1662_v55 = vmax.f32 %v1472_v50, %v1658_v58  ;;  %v3243_v21 = vor.u32 %v3519_v20, %v3242_v2  ;;  %v3492_v50 = vld [vmem:[#allocation9 + $0x104] sm:$0xf]  ;;  %v3239_v20 = vor.u32 %v3516_v18, %v3236_v19 }
 0x115   :  { %2116 = vmatpush.bf16.msra.mxu3 %v3031_v16  ;;  %2137 = vmatpush.bf16.msra.mxu2 %v3199_v61  ;;  %v3143_v58 = vor.u32 %v3492_v50, %v3140_v51  ;;  %v3260_v61 = vld [vmem:[#allocation9 + $0x1f8] sm:$0xf0] }
 0x116   :  { %v1666_v60 = vpack.c.bf16 %v1662_v55, %v1662_v55  ;;  %v3804_v63 = vpop.f32.mrf.mxu0  ;;  %2100 = vmatpush.bf16.msrb.mxu0 %v3243_v21  ;;  %v3514_v21 = vld [vmem:[#allocation9 + $0x1b4] sm:$0xf] }
 0x117   :  { %2130 = vmatpush.bf16.msra.mxu1 %v3087_v30  ;;  %v1473_v62 = vpop.f32.mrf.mxu3  ;;  %v1484_v0 = vpop.f32.mrf.mxu1  ;;  %v3235_v30 = vor.u32 %v3517_v28, %v3234_v27  ;;  %v304_v27 = vperm.slane %v3780_v49, 3  ;;  %v3510_v28 = vld [vmem:[#allocation9 + $0x194] sm:$0xf] }
 0x118   :  { %2080 = vmatmul.bf16.vlgmr.msrb.gmra.mxu1 %v1666_v60 }
 0x119   :  { %2117 = vmatpush.bf16.msra.mxu3 %v3023_v8  ;;  %v3167_v8 = vor.u32 %v3498_v22, %v3164_v23  ;;  %v3228_v22 = vld [vmem:[#allocation9 + $0x1b8] sm:$0xf0] }
 0x11a   :  { %2101 = vmatpush.bf16.msrb.mxu0 %v3235_v30  ;;  %v3231_v23 = vor.u32 %v3514_v21, %v3228_v22  ;;  %v3215_v30 = vor.u32 %v3510_v28, %v3212_v29 }
 0x11b   :  { %2131 = vmatpush.bf16.msra.mxu1 %v3079_v26  ;;  %v3218_v26 = vld [vmem:[#allocation9 + $0x1a0] sm:$0xf] }
 0x11c   :  { %v3219_v47 = vor.u32 %v3513_v45, %v3218_v26 }
 0x11d   :  { %2118 = vmatpush.bf16.msra.mxu3 %v3015_v41  ;;  %v1485_v41 = vadd.f32 %v1484_v0, %v303_v35  ;;  %v3508_v35 = vld [vmem:[#allocation9 + $0x184] sm:$0xf] }
 0x11e   :  { %v1512_v11 = vpop.f32.mrf.mxu0  ;;  %2102 = vmatpush.bf16.msrb.mxu0 %v3227_v40 }
 0x11f   :  { %v1486_v56 = vpop.f32.mrf.mxu1  ;;  %v3518_v11 = vld [vmem:[#allocation9 + $0x1d4] sm:$0xf] }
 0x120   :  { %2119 = vmatmul.bf16.vlgmr.msra.gmra.mxu3 %v3797_v39  ;;  %v3504_v39 = vld [vmem:[#allocation9 + $0x164] sm:$0xf] }
 0x121   :  { %v3191_v38 = vor.u32 %v3504_v39, %v3188_v1 }
 0x122   :  { %v1523_v16 = vpop.f32.mrf.mxu2  ;;  %2103 = vmatpush.bf16.msrb.mxu0 %v3219_v47 }
 0x123   :  { %2138 = vmatpush.bf16.msra.mxu2 %v3191_v38  ;;  %v1497_v10 = vpop.f32.mrf.mxu3 }
 0x124   :  { %v1498_v48 = vadd.f32 %v1497_v10, %v1485_v41 }
 0x126   :  { %v1562_v25 = vpop.f32.mrf.mxu0  ;;  %v1511_v57 = vadd.f32 %v3804_v63, %v1498_v48  ;;  %2104 = vmatpush.bf16.msrb.mxu0 %v3211_v32  ;;  %v3255_v63 = vor.u32 %v3520_v4, %v3252_v5 }
 0x127   :  { %2139 = vmatpush.bf16.msra.mxu2 %v3183_v12  ;;  %v3244_v12 = vld [vmem:[#allocation9 + $0x1d8] sm:$0xf0] }
 0x128   :  { %2132 = vmatmul.bf16.vlgmr.msra.gmra.mxu1 %v1666_v60  ;;  %v3522_v60 = vld [vmem:[#allocation9 + $0x1f4] sm:$0xf]  ;;  %v1524_v62 = vadd.f32 %v1523_v16, %v1511_v57  ;;  %v3247_v15 = vor.u32 %v3518_v11, %v3244_v12 }
 0x129   :  { %v3263_v39 = vor.u32 %v3522_v60, %v3260_v61 }
 0x12a   :  { %v1525_v17 = vpop.f32.mrf.mxu2  ;;  %2105 = vmatpush.bf16.msrb.mxu0 %v3203_v36 }
 0x12b   :  { %2140 = vmatpush.bf16.msra.mxu2 %v3175_v46  ;;  %v1499_v24 = vpop.f32.mrf.mxu3  ;;  %v3204_v17 = vld [vmem:[#allocation9 + $0x188] sm:$0xf0] }
 0x12c   :  { %v3512_v24 = vld [vmem:[#allocation9 + $0x1a4] sm:$0xf]  ;;  %v3207_v40 = vor.u32 %v3508_v35, %v3204_v17 }
 0x12e   :  { %v1564_v44 = vpop.f32.mrf.mxu0  ;;  %2150 = vmatpush.bf16.msra.mxu0 %v3263_v39 }
 0x12f   :  { %2141 = vmatpush.bf16.msra.mxu2 %v3167_v8 }
 0x132   :  { %2151 = vmatpush.bf16.msra.mxu0 %v3255_v63 }
 0x133   :  { %2142 = vmatpush.bf16.msra.mxu2 %v3159_v37 }
 0x136   :  { %2152 = vmatpush.bf16.msra.mxu0 %v3247_v15  ;;  %v2167_v15 = vld [vmem:[%s3823_s5] sm:$0x3]  ;;  %s3676_s5 = smov [#allocation11]  }
 0x137   :  { %2143 = vmatpush.bf16.msra.mxu2 %v3151_v52  ;;  %v1536_v55 = vpop.f32.mrf.mxu1  ;;  %v2168_v18 = vunpack.c.l.bf16 %v2167_v15  ;;  %s2206_s25 = sshll.u32 %s3676_s5, 4  ;;  %s2207_s25 = int_to_ptr.vmem [resolvable:$true] %s2206_s25 }
 0x138   :  { %v1537_v1 = vadd.f32 %v1536_v55, %v1524_v62 }
 0x13a   :  { %v1588_v0 = vpop.f32.mrf.mxu0  ;;  %2153 = vmatpush.bf16.msra.mxu0 %v3239_v20  ;;  %v2171_v20 = vperm.slane %v2168_v18, 2 }
 0x13b   :  { %2144 = vmatpush.bf16.msra.mxu2 %v3143_v58 }
 0x13e   :  { %2154 = vmatpush.bf16.msra.mxu0 %v3231_v23 }
 0x13f   :  { %v1538_v38 = vpop.f32.mrf.mxu1 }
 0x142   :  { %v1575_v9 = vpop.f32.mrf.mxu2  ;;  %v1590_v14 = vpop.f32.mrf.mxu0 }
 0x143   :  { %v1549_v3 = vpop.f32.mrf.mxu3  ;;  %v1576_v33 = vadd.f32 %v1575_v9, %v304_v27  ;;  %v3675_v9 = vmov 0  }
 0x144   :  { %v1550_v6 = vadd.f32 %v1549_v3, %v1537_v1  ;;  %v1736_v1 = vperm.slane %v1733_v31, 1  ;;  %3534 = vset.pattern.permute.xlu0 %v3675_v9 }
 0x145   :  { %v1589_v34 = vadd.f32 %v1588_v0, %v1576_v33 }
 0x146   :  { %v1563_v10 = vadd.f32 %v1562_v25, %v1550_v6  ;;  %v3220_v25 = vld [vmem:[#allocation9 + $0x1a8] sm:$0xf0]  ;;  %v2181_v6 = vld [vmem:[#allocation2] sm:$0x1] }
 0x147   :  { %v3223_v8 = vor.u32 %v3512_v24, %v3220_v25  ;;  %2184 = vperm.xlu0 %3534, %v2181_v6  }
 0x148   :  { %v1659_v13 = vmul.f32 0.2, %v1563_v10 }
 0x149   :  { %2155 = vmatpush.bf16.msra.mxu0 %v3223_v8  ;;  %v2175_v8 = vperm.slane %v2171_v20, 0 }
 0x14a   :  { %v1663_v16 = vmax.f32 %v1563_v10, %v1659_v13  ;;  %v1577_v2 = vpop.f32.mrf.mxu2 }
 0x14b   :  { %v1551_v56 = vpop.f32.mrf.mxu3  ;;  %v2170_v2 = vperm.slane %v2168_v18, 0 }
 0x14c   :  { %v1667_v46 = vpack.c.bf16 %v1663_v16, %v1663_v16 }
 0x14d   :  { %2156 = vmatpush.bf16.msra.mxu0 %v3215_v30  ;;  %v2174_v25 = vperm.slane %v2170_v2, 0 }
 0x14e   :  { %2093 = vmatmul.bf16.vlgmr.msrb.gmra.mxu2 %v1667_v46 }
 0x151   :  { %2157 = vmatpush.bf16.msra.mxu0 %v3207_v40 }
 0x157   :  { %v1601_v7 = vpop.f32.mrf.mxu1 }
 0x158   :  { %v1602_v41 = vadd.f32 %v1601_v7, %v1589_v34 }
 0x15a   :  { %v1640_v37 = vpop.f32.mrf.mxu0 }
 0x15e   :  { %2145 = vmatmul.bf16.vlgmr.msra.gmra.mxu2 %v1667_v46 }
 0x15f   :  { %v1603_v42 = vpop.f32.mrf.mxu1 }
 0x162   :  { %v1627_v52 = vpop.f32.mrf.mxu2  ;;  %v1642_v26 = vpop.f32.mrf.mxu0 }
 0x163   :  { %v1614_v43 = vpop.f32.mrf.mxu3 }
 0x164   :  { %v1615_v44 = vadd.f32 %v1614_v43, %v1602_v41  ;;  %v2195_v43 = vlaneseq }
 0x166   :  { %v1628_v49 = vadd.f32 %v1627_v52, %v1615_v44  ;;  %v2196_v44 = vand.u32 127, %v2195_v43 }
 0x167   :  { %v1653_v47 = vpop.f32.mrf.mxu1 }
 0x168   :  { %v1641_v45 = vadd.f32 %v1640_v37, %v1628_v49 }
 0x16a   :  { %v1654_v48 = vadd.f32 %v1653_v47, %v1641_v45  ;;  %v1629_v51 = vpop.f32.mrf.mxu2 }
 0x16b   :  { %v1616_v50 = vpop.f32.mrf.mxu3 }
 0x16c   :  { %v1660_v53 = vmul.f32 0.2, %v1654_v48 }
 0x16e   :  { %v1664_v58 = vmax.f32 %v1654_v48, %v1660_v53 }
 0x16f   :  { %v1655_v55 = vpop.f32.mrf.mxu1 }
 0x170   :  { %v1668_v54 = vpack.c.bf16 %v1664_v58, %v1664_v58 }
 0x172   :  { %2106 = vmatmul.bf16.vlgmr.msrb.gmra.mxu0 %v1668_v54 }
 0x182   :  { %2158 = vmatmul.bf16.vlgmr.msra.gmra.mxu0 %v1668_v54 }
 0x183   :  { %v2068_v32 = vpop.f32.mrf.mxu3 }
 0x184   :  { %v2069_v60 = vadd.f32 %v2068_v32, %v1735_v59 }
 0x18b   :  { %v2070_v57 = vpop.f32.mrf.mxu3 }
 0x195   :  { %v2081_v61 = vpop.f32.mrf.mxu1 }
 0x196   :  { %v2082_v62 = vadd.f32 %v2081_v61, %v2069_v60 }
 0x19d   :  { %v2083_v39 = vpop.f32.mrf.mxu1 }
 0x1a3   :  { %v2120_v36 = vpop.f32.mrf.mxu3 }
 0x1a4   :  { %v2121_v38 = vadd.f32 %v2120_v36, %v1736_v1 }
 0x1a5   :  { %v2133_v3 = vpop.f32.mrf.mxu1 }
 0x1a6   :  { %v2134_v4 = vadd.f32 %v2133_v3, %v2121_v38 }
 0x1ab   :  { %v2122_v0 = vpop.f32.mrf.mxu3 }
 0x1ad   :  { %v2135_v5 = vpop.f32.mrf.mxu1 }
 0x1b9   :  { %v2185_v7 = vpop.permute.xlu0 %2184 }
 0x1ba   :  { %v2187_v34 = vperm.slane %v2185_v7, 0 }
 0x1d1   :  { %v2094_v63 = vpop.f32.mrf.mxu2 }
 0x1d2   :  { %v2095_v16 = vadd.f32 %v2094_v63, %v2082_v62 }
 0x1d9   :  { %v2096_v10 = vpop.f32.mrf.mxu2 }
 0x1e1   :  { %v2146_v11 = vpop.f32.mrf.mxu2 }
 0x1e2   :  { %v2147_v19 = vadd.f32 %v2146_v11, %v2134_v4 }
 0x1e9   :  { %v2148_v12 = vpop.f32.mrf.mxu2 }
 0x1ef   :  { %v2107_v13 = vpop.f32.mrf.mxu0 }
 0x1f0   :  { %v2108_v56 = vadd.f32 %v2107_v13, %v2095_v16 }
 0x1f2   :  { %v2163_v46 = vmul.f32 0.2, %v2108_v56 }
 0x1f4   :  { %v2165_v23 = vmax.f32 %v2108_v56, %v2163_v46 }
 0x1f6   :  { %v2176_v28 = vmul.f32 %v2174_v25, %v2165_v23 }
 0x1f7   :  { %v2109_v14 = vpop.f32.mrf.mxu0 }
 0x1ff   :  { %v2159_v21 = vpop.f32.mrf.mxu0 }
 0x200   :  { %v2160_v22 = vadd.f32 %v2159_v21, %v2147_v19 }
 0x202   :  { %v2164_v24 = vmul.f32 0.2, %v2160_v22 }
 0x204   :  { %v2166_v27 = vmax.f32 %v2160_v22, %v2164_v24 }
 0x206   :  { %v2177_v29 = vmul.f32 %v2175_v8, %v2166_v27 }
 0x207   :  { %v2161_v30 = vpop.f32.mrf.mxu0 }
 0x208   :  { %v2178_v33 = vadd.f32 %v2177_v29, %v2176_v28 }
 0x20a   :  { %2179 = vadd.xlane.f32.xlu0 %v2178_v33 }
 0x27d   :  { %v2180_v35 = vpop.xlane.xlu0 %2179 }
 0x27e   :  { %v2188_v17 = vadd.f32 %v2187_v34, %v2180_v35 }
 0x280   :  { %v2189_v37 = vsub.f32 0.0, %v2188_v17 }
 0x282   :  { %v2190_v40 = vmul.f32 1.442695, %v2189_v37 }
 0x284   :  { %3535 = vpow2.f32 %v2190_v40 }
 0x28a   :  { %v3536_v41 = vpop.eup %3535 }
 0x28b   :  { %v2192_v42 = vadd.f32 1.0, %v3536_v41 }
 0x28d   :  { %3537 = vrcp.f32 %v2192_v42 }
 0x293   :  { %v3538_v52 = vpop.eup %3537 }
 0x294   :  { %v2197_v49 = vperm.slane %v3538_v52, %v2196_v44 }
 0x296   :  { %2200 = vst.msk [vmem:[#allocation11] sm:$0x1] %vm2199_vm1, %v2197_v49 }
 0x297   :  { %2211 = dma.vmem_to_hbm [thread:$0]  %s2207_s25, 16, %s2209_s28, [#allocation5]  }
 0x298   :  { %3665 = dma.done.wait [#allocation5], 16  }
 0x299   :  { %3666 = vsyncadd [#allocation5], 4294967280 }
 0x29a   :  { %2216 = vsyncpa [#allocation4], 1 }
 0x29b   :  { %2217 = vsyncpa [#allocation7], 1 }
 0x29c   :  { %2218 = vsyncpa [#allocation10], 1 }
 0x29d   :  { %2219 = vsyncpa [#allocation5], 1 }

</bundles_post_ra>
